<compile_context>
chip_gen: v7x
topology: tpu7x:2x2x1
jax: 0.10.0
libtpu: 0.0.40
codegen_flags: <defaults>
</compile_context>

<pallas_src>
import functools
import math

import jax
import jax.numpy as jnp
from jax.experimental import pallas as pl
from jax.experimental.pallas import tpu as pltpu


# ---------------------------------------------------------------------------
# Pallas kernel: full GAT forward for TB batch elements per grid step
# ---------------------------------------------------------------------------

def _gat_fused_kernel(x_ref, adj_ref, wpk_ref, wo_ref, wfc_ref, scal_ref,
                      out_ref, *, alpha, nheads, nhid, tb, n):
    """Shapes per grid step:
       x_ref   (tb, n, Fin)            node features
       adj_ref (tb, n, n) int8         adjacency mask (0/1)
       wpk_ref (Fin, H + 2*nheads)     packed [W_all | W_all @ A_bd], H=nheads*nhid
       wo_ref  (H, 1)                  out_att weight (nclass == 1)
       wfc_ref (1, n)                  fc1 weight row
       scal_ref (3,) SMEM              [a1_out, a2_out, fc1_bias]
       out_ref (1, tb)                 final logits, lane-dense slab
    """
    H = nheads * nhid
    mask = adj_ref[...] != 0                                          # (tb, n, n)
    neg = jnp.float32(-9.0e15)

    def masked_softmax(e):
        # LeakyReLU fused into the adjacency-mask select; exact reciprocal
        # (EUP path, off the VALU critical path) keeps parity with the ref.
        logits = jnp.where(mask, jnp.where(e > 0, e, alpha * e), neg)
        m = jnp.max(logits, axis=-1, keepdims=True)
        p = jnp.exp(logits - m)
        s = jnp.sum(p, axis=-1, keepdims=True)
        return p * pl.reciprocal(s, approx=False)

    def elu(v):
        # clamp the exp argument so the untaken branch never overflows
        return jnp.where(v > 0, v, jnp.exp(jnp.minimum(v, 0.0)) - 1.0)

    # ---- one shared MXU matmul: all heads' Wh AND all attention projections -
    x2d = x_ref[...].reshape(tb * n, -1)                              # (tb*n, Fin)
    hw = jnp.dot(x2d, wpk_ref[...], preferred_element_type=jnp.float32)
    Wh = hw[:, :H].reshape(tb, n, H)                                  # (tb, n, H)
    proj = hw[:, H:].reshape(tb, n, 2 * nheads)                       # (tb, n, 2*nheads)
    projT = jnp.transpose(proj, (0, 2, 1))                            # one batched transpose

    wo = wo_ref[...]                                                  # (H, 1)
    # out_att's first matmul (concat(heads) @ Wo) is accumulated head by head,
    # so the concatenated (tb*n, H) ELU block is never materialized.
    # Static loop: nheads is tiny and head slices are static lane offsets
    # (a fori_loop would force dynamic, non-128-aligned lane slices); at large
    # nheads/N, move heads onto a grid axis instead.
    Wh2f = jnp.zeros((tb * n, 1), jnp.float32)
    for hd in range(nheads):
        e = proj[:, :, 2 * hd:2 * hd + 1] + projT[:, 2 * hd + 1:2 * hd + 2, :]
        att = masked_softmax(e)                                       # (tb, n, n)
        hp = jnp.einsum("bqk,bkd->bqd", att,
                        Wh[:, :, hd * nhid:(hd + 1) * nhid],
                        preferred_element_type=jnp.float32)           # (tb, n, nhid)
        hp = elu(hp)                                                  # concat=True branch
        Wh2f = Wh2f + jnp.dot(hp.reshape(tb * n, nhid),
                              wo[hd * nhid:(hd + 1) * nhid, :],
                              preferred_element_type=jnp.float32)     # (tb*n, 1)
    Wh2 = Wh2f.reshape(tb, n, 1)

    # ---- out_att (nclass=1, concat=False) + GAT-level F.elu ------------------
    a1o = scal_ref[0]
    a2o = scal_ref[1]
    Wh2T = jnp.transpose(Wh2, (0, 2, 1))                              # (tb, 1, n)
    e2 = a1o * Wh2 + a2o * Wh2T                                       # (tb, n, n)
    att2 = masked_softmax(e2)
    # att2 @ Wh2 with a 1-wide output: do it as multiply + lane-reduce.
    h2 = jnp.sum(att2 * Wh2T, axis=-1, keepdims=True)                 # (tb, n, 1)
    h2 = elu(h2)                                                      # F.elu

    # ---- fc1: Linear(n, 1), lane-dense (1, tb) output slab -------------------
    h2t = jnp.transpose(h2[:, :, 0])                                  # (n, tb)
    fc = jnp.dot(wfc_ref[...], h2t,
                 preferred_element_type=jnp.float32) + scal_ref[2]    # (1, tb)
    out_ref[...] = fc.astype(out_ref.dtype)


# ---------------------------------------------------------------------------
# Wrapper
# ---------------------------------------------------------------------------

def _pick_batch_tile(B):
    # Amortize per-grid-step overhead while keeping >= 2 grid steps so the
    # ("parallel",) batch axis can feed both v7x TensorCores.
    for cand in (16, 8, 4, 2):
        if B % cand == 0 and B // cand >= 2:
            return cand
    return 1


def gat_forward(params, x, adj, *, alpha, batch_tile=None,
                mxu_dtype=jnp.float32):
    """Reproduces GAT.forward (dropout p=0.0 => identity). Returns (B, 1).

    mxu_dtype: set to jnp.bfloat16 on v6e/v7x at scale to reach MXU peak and
    halve x/weight DMA; f32 default keeps exact parity with the reference.
    """
    B, N, Fin = x.shape
    heads = params["attentions"]            # list of (W (Fin,nhid), a (2*nhid,1))
    nheads = len(heads)
    nhid = heads[0][0].shape[1]
    H = nheads * nhid
    Wo, ao = params["out_att"]              # Wo (H, nclass), ao (2*nclass, 1)
    w_fc, b_fc = params["fc1"]              # w_fc (1, N), b_fc (1,)
    assert Wo.shape[1] == 1, "x.squeeze() + Linear(nodes_number, 1) implies nclass == 1"

    tb = _pick_batch_tile(B) if batch_tile is None else batch_tile
    assert B % tb == 0
    G = B // tb

    # Pack parameters into lane-dense, MXU-friendly operands.
    W_all = jnp.concatenate([W for W, _ in heads], axis=1)                  # (Fin, H)
    A_bd = jax.scipy.linalg.block_diag(
        *[jnp.concatenate([a[:nhid], a[nhid:]], axis=1) for _, a in heads]) # (H, 2*nheads)
    W_proj = W_all @ A_bd                                                   # (Fin, 2*nheads)
    W_pk = jnp.concatenate([W_all, W_proj], axis=1).astype(mxu_dtype)       # (Fin, H+2*nheads)
    x_in = x.astype(mxu_dtype)
    adj_i8 = (adj > 0).astype(jnp.int8)                                     # mask only
    scal = jnp.concatenate([ao.reshape(-1), b_fc.reshape(-1)]).astype(jnp.float32)  # (3,)
    wfc_row = w_fc.reshape(1, N).astype(jnp.float32)                        # (1, N)

    kernel = functools.partial(_gat_fused_kernel, alpha=alpha,
                               nheads=nheads, nhid=nhid, tb=tb, n=N)

    flops = int(2 * B * (N * Fin * (H + 2 * nheads)
                         + nheads * (N * N * nhid + N * nhid)
                         + N * N + N))
    transcendentals = int(B * ((nheads + 1) * N * N + nheads * N * nhid + N))
    bytes_accessed = int(x_in.size * x_in.dtype.itemsize + adj_i8.size
                         + W_pk.size * W_pk.dtype.itemsize
                         + Wo.size * 4 + wfc_row.size * 4 + scal.size * 4
                         + B * 4)

    # TODO(synk): stochastic F.dropout (training, p>0) not implemented; with
    #             dropout=0.0 it is exactly the identity.
    # TODO(synk): for large N, tile the key axis of adj with a flash-style
    #             online softmax and set vmem_limit_bytes (budget against v7x's
    #             64 MiB); unnecessary at toy N.
    out = pl.pallas_call(
        kernel,
        out_shape=jax.ShapeDtypeStruct((G, 1, tb), jnp.float32),
        grid_spec=pltpu.PrefetchScalarGridSpec(
            num_scalar_prefetch=0,
            grid=(G,),
            in_specs=[
                pl.BlockSpec((tb, N, Fin), lambda g: (g, 0, 0)),      # x (TB per step)
                pl.BlockSpec((tb, N, N), lambda g: (g, 0, 0)),        # adj, int8
                pl.BlockSpec((Fin, H + 2 * nheads), lambda g: (0, 0)),# packed weight
                pl.BlockSpec((H, 1), lambda g: (0, 0)),               # Wo
                pl.BlockSpec((1, N), lambda g: (0, 0)),               # fc1 weight row
                pl.BlockSpec(memory_space=pltpu.MemorySpace.SMEM),    # [a1o, a2o, b_fc]
            ],
            out_specs=pl.BlockSpec((None, 1, tb), lambda g: (g, 0, 0)),
        ),
        compiler_params=pltpu.CompilerParams(
            dimension_semantics=("parallel",)),
        cost_estimate=pl.CostEstimate(flops=flops,
                                      transcendentals=transcendentals,
                                      bytes_accessed=bytes_accessed),
    )(x_in, adj_i8, W_pk, Wo.astype(jnp.float32), wfc_row, scal)
    return out.reshape(B, 1)


# ---------------------------------------------------------------------------
# Pure-JAX reference (mirrors the PyTorch module, dropout p=0)
# ---------------------------------------------------------------------------

def gat_reference(params, x, adj, *, alpha):
    def layer(h, W, a, concat):
        Fout = W.shape[1]
        Wh = jnp.einsum("bnf,fo->bno", h, W)
        Wh1 = jnp.einsum("bno,oi->bni", Wh, a[:Fout])
        Wh2 = jnp.einsum("bno,oi->bni", Wh, a[Fout:])
        e = Wh1 + jnp.swapaxes(Wh2, 1, 2)
        e = jnp.where(e > 0, e, alpha * e)
        att = jnp.where(adj > 0, e, -9.0e15)
        att = jax.nn.softmax(att, axis=-1)
        hp = jnp.einsum("bqk,bko->bqo", att, Wh)
        return jax.nn.elu(hp) if concat else hp

    h = jnp.concatenate([layer(x, W, a, True) for W, a in params["attentions"]],
                        axis=-1)
    Wo, ao = params["out_att"]
    h = jax.nn.elu(layer(h, Wo, ao, False))[..., 0]          # (B, N), nclass == 1
    w_fc, b_fc = params["fc1"]
    return h @ w_fc.T + b_fc


# ---------------------------------------------------------------------------
# Deterministic example (matches the PyTorch module's parameter shapes)
# ---------------------------------------------------------------------------

def xavier_uniform(key, shape, gain):
    fan_in, fan_out = shape[0], shape[1]
    bound = gain * math.sqrt(6.0 / (fan_in + fan_out))
    return jax.random.uniform(key, shape, jnp.float32, -bound, bound)


if __name__ == "__main__":
    B, N = 8, 16                       # batch, nodes_number
    nfeat, nhid, nclass, nheads = 8, 8, 1, 2
    dropout, alpha = 0.0, 0.2          # dropout=0.0 -> exact identity at forward

    key = jax.random.PRNGKey(0)
    keys = jax.random.split(key, 12)

    # inputs
    x = jax.random.normal(keys[0], (B, N, nfeat), jnp.float32)
    adj = (jax.random.uniform(keys[1], (B, N, N)) > 0.5).astype(jnp.float32)

    # parameters
    att_params = []
    for i in range(nheads):
        kW, ka = jax.random.split(keys[2 + i])
        W = xavier_uniform(kW, (nfeat, nhid), 1.414)
        a = xavier_uniform(ka, (2 * nhid, 1), 1.414)
        att_params.append((W, a))
    kWo, kao = jax.random.split(keys[6])
    Wo = xavier_uniform(kWo, (nhid * nheads, nclass), 1.414)
    ao = xavier_uniform(kao, (2 * nclass, 1), 1.414)
    bnd = 1.0 / math.sqrt(N)
    w_fc = jax.random.uniform(keys[7], (1, N), jnp.float32, -bnd, bnd)
    b_fc = jax.random.uniform(keys[8], (1,), jnp.float32, -bnd, bnd)

    params = {"attentions": att_params, "out_att": (Wo, ao), "fc1": (w_fc, b_fc)}

    out = gat_forward(params, x, adj, alpha=alpha)
    out = jax.block_until_ready(out)
    ref = jax.block_until_ready(gat_reference(params, x, adj, alpha=alpha))

    assert out.shape == (B, 1) and bool(jnp.all(jnp.isfinite(out)))
    # exact reciprocal in-kernel => tight tolerance vs the pure-JAX reference
    assert bool(jnp.allclose(out, ref, rtol=1e-3, atol=1e-3)), (out, ref)
    print("KERNEL_OK")
</pallas_src>

<mosaic_0001>
module attributes {stable_mosaic.version = 11 : i64} {
  func.func @_gat_fused_kernel(%arg0: i32, %arg1: memref<4x16x8xf32, #tpu.memory_space<vmem>>, %arg2: memref<4x16x16xi8, #tpu.memory_space<vmem>>, %arg3: memref<8x20xf32, #tpu.memory_space<vmem>>, %arg4: memref<16x1xf32, #tpu.memory_space<vmem>>, %arg5: memref<1x16xf32, #tpu.memory_space<vmem>>, %arg6: memref<3xf32, #tpu.memory_space<smem>>, %arg7: memref<1x1x4xf32, #tpu.memory_space<vmem>>) attributes {dimension_semantics = [#tpu.dimension_semantics<parallel>], iteration_bounds = array<i64: 2>, scalar_prefetch = 0 : i64, scratch_operands = 0 : i64, tpu.core_type = #tpu.core_type<tc>, window_params = [{transform_indices = @transform_0, window_bounds = array<i64: 4, 16, 8>}, {transform_indices = @transform_1, window_bounds = array<i64: 4, 16, 16>}, {pipeline_mode = #tpu.pipeline_mode<synchronous>, transform_indices = @transform_2, window_bounds = array<i64: 8, 20>}, {pipeline_mode = #tpu.pipeline_mode<synchronous>, transform_indices = @transform_3, window_bounds = array<i64: 16, 1>}, {pipeline_mode = #tpu.pipeline_mode<synchronous>, transform_indices = @transform_4, window_bounds = array<i64: 1, 16>}, {transform_indices = @transform_5, window_bounds = array<i64: 3>}, {transform_indices = @transform_6, window_bounds = array<i64: 1, 1, 4>}]} {
    %c0 = arith.constant 0 : index
    %c0_0 = arith.constant 0 : index
    %c0_1 = arith.constant 0 : index
    %0 = vector.load %arg2[%c0, %c0_0, %c0_1] : memref<4x16x16xi8, #tpu.memory_space<vmem>>, vector<4x16x16xi8>
    %c0_i8 = arith.constant 0 : i8
    %1 = vector.broadcast %c0_i8 : i8 to vector<4x16x16xi8>
    %2 = arith.cmpi ne, %0, %1 : vector<4x16x16xi8>
    %c0_2 = arith.constant 0 : index
    %c0_3 = arith.constant 0 : index
    %c0_4 = arith.constant 0 : index
    %3 = vector.load %arg1[%c0_2, %c0_3, %c0_4] : memref<4x16x8xf32, #tpu.memory_space<vmem>>, vector<4x16x8xf32>
    %4 = vector.shape_cast %3 : vector<4x16x8xf32> to vector<64x8xf32>
    %c0_5 = arith.constant 0 : index
    %c0_6 = arith.constant 0 : index
    %5 = vector.load %arg3[%c0_5, %c0_6] : memref<8x20xf32, #tpu.memory_space<vmem>>, vector<8x20xf32>
    %cst = arith.constant dense<0.000000e+00> : vector<64x20xf32>
    %6 = tpu.matmul %4, %5, %cst {dimension_numbers = #tpu.dot_dimension_numbers<[1], [0], [0], [1], [0, 0, 1, 1], [], []>} : vector<64x8xf32>, vector<8x20xf32>, vector<64x20xf32> -> vector<64x20xf32>
    %7 = vector.extract_strided_slice %6 {offsets = [0, 0], sizes = [64, 16], strides = [1, 1]} : vector<64x20xf32> to vector<64x16xf32>
    %8 = vector.shape_cast %7 : vector<64x16xf32> to vector<4x16x16xf32>
    %9 = vector.extract_strided_slice %6 {offsets = [0, 16], sizes = [64, 4], strides = [1, 1]} : vector<64x20xf32> to vector<64x4xf32>
    %10 = vector.shape_cast %9 : vector<64x4xf32> to vector<4x16x4xf32>
    %11 = tpu.transpose %10, [0, 2, 1] : vector<4x16x4xf32> -> vector<4x4x16xf32>
    %c0_7 = arith.constant 0 : index
    %c0_8 = arith.constant 0 : index
    %12 = vector.load %arg4[%c0_7, %c0_8] : memref<16x1xf32, #tpu.memory_space<vmem>>, vector<16x1xf32>
    %cst_9 = arith.constant 0.000000e+00 : f32
    %13 = vector.broadcast %cst_9 : f32 to vector<64x1xf32>
    %14 = vector.extract_strided_slice %10 {offsets = [0, 0, 0], sizes = [4, 16, 1], strides = [1, 1, 1]} : vector<4x16x4xf32> to vector<4x16x1xf32>
    %15 = vector.extract_strided_slice %11 {offsets = [0, 1, 0], sizes = [4, 1, 16], strides = [1, 1, 1]} : vector<4x4x16xf32> to vector<4x1x16xf32>
    %16 = vector.broadcast %14 : vector<4x16x1xf32> to vector<4x16x16xf32>
    %17 = vector.broadcast %15 : vector<4x1x16xf32> to vector<4x16x16xf32>
    %18 = arith.addf %16, %17 : vector<4x16x16xf32>
    %cst_10 = arith.constant 0.000000e+00 : f32
    %19 = vector.broadcast %cst_10 : f32 to vector<4x16x16xf32>
    %20 = arith.cmpf ogt, %18, %19 : vector<4x16x16xf32>
    %cst_11 = arith.constant 2.000000e-01 : f32
    %21 = vector.broadcast %cst_11 : f32 to vector<4x16x16xf32>
    %22 = arith.mulf %21, %18 : vector<4x16x16xf32>
    %23 = arith.select %20, %18, %22 : vector<4x16x16xi1>, vector<4x16x16xf32>
    %cst_12 = arith.constant -9.000000e+15 : f32
    %24 = vector.broadcast %cst_12 : f32 to vector<4x16x16xf32>
    %25 = arith.select %2, %23, %24 : vector<4x16x16xi1>, vector<4x16x16xf32>
    %cst_13 = arith.constant dense<0xFF800000> : vector<4x16xf32>
    %26 = vector.multi_reduction <maximumf>, %25, %cst_13 [2] : vector<4x16x16xf32> to vector<4x16xf32>
    %27 = vector.shape_cast %26 : vector<4x16xf32> to vector<4x16x1xf32>
    %28 = vector.broadcast %27 : vector<4x16x1xf32> to vector<4x16x16xf32>
    %29 = arith.subf %25, %28 : vector<4x16x16xf32>
    %30 = math.exp %29 : vector<4x16x16xf32>
    %cst_14 = arith.constant dense<0.000000e+00> : vector<4x16xf32>
    %31 = vector.multi_reduction <add>, %30, %cst_14 [2] : vector<4x16x16xf32> to vector<4x16xf32>
    %32 = vector.shape_cast %31 : vector<4x16xf32> to vector<4x16x1xf32>
    %33 = tpu.reciprocal %32 : vector<4x16x1xf32> -> vector<4x16x1xf32>
    %34 = vector.broadcast %33 : vector<4x16x1xf32> to vector<4x16x16xf32>
    %35 = arith.mulf %30, %34 : vector<4x16x16xf32>
    %36 = vector.extract_strided_slice %8 {offsets = [0, 0, 0], sizes = [4, 16, 8], strides = [1, 1, 1]} : vector<4x16x16xf32> to vector<4x16x8xf32>
    "tpu.trace_start"() <{level = 10 : i32, message = "bqk,bkd->bqd"}> : () -> ()
    %cst_15 = arith.constant dense<0.000000e+00> : vector<4x16x8xf32>
    %37 = tpu.matmul %35, %36, %cst_15 {dimension_numbers = #tpu.dot_dimension_numbers<[2], [1], [1], [2], [0, 0, 0, 1, 1, 2], [0], [0]>} : vector<4x16x16xf32>, vector<4x16x8xf32>, vector<4x16x8xf32> -> vector<4x16x8xf32>
    %cst_16 = arith.constant 0.000000e+00 : f32
    "tpu.trace_stop"() : () -> ()
    %38 = vector.broadcast %cst_16 : f32 to vector<4x16x8xf32>
    %39 = arith.cmpf ogt, %37, %38 : vector<4x16x8xf32>
    %cst_17 = arith.constant 0.000000e+00 : f32
    %40 = vector.broadcast %cst_17 : f32 to vector<4x16x8xf32>
    %41 = arith.minimumf %37, %40 : vector<4x16x8xf32>
    %42 = math.exp %41 : vector<4x16x8xf32>
    %cst_18 = arith.constant 1.000000e+00 : f32
    %43 = vector.broadcast %cst_18 : f32 to vector<4x16x8xf32>
    %44 = arith.subf %42, %43 : vector<4x16x8xf32>
    %45 = arith.select %39, %37, %44 : vector<4x16x8xi1>, vector<4x16x8xf32>
    %46 = vector.shape_cast %45 : vector<4x16x8xf32> to vector<64x8xf32>
    %47 = vector.extract_strided_slice %12 {offsets = [0, 0], sizes = [8, 1], strides = [1, 1]} : vector<16x1xf32> to vector<8x1xf32>
    %cst_19 = arith.constant dense<0.000000e+00> : vector<64x1xf32>
    %48 = tpu.matmul %46, %47, %cst_19 {dimension_numbers = #tpu.dot_dimension_numbers<[1], [0], [0], [1], [0, 0, 1, 1], [], []>} : vector<64x8xf32>, vector<8x1xf32>, vector<64x1xf32> -> vector<64x1xf32>
    %49 = arith.addf %13, %48 : vector<64x1xf32>
    %50 = vector.extract_strided_slice %10 {offsets = [0, 0, 2], sizes = [4, 16, 1], strides = [1, 1, 1]} : vector<4x16x4xf32> to vector<4x16x1xf32>
    %51 = vector.extract_strided_slice %11 {offsets = [0, 3, 0], sizes = [4, 1, 16], strides = [1, 1, 1]} : vector<4x4x16xf32> to vector<4x1x16xf32>
    %52 = vector.broadcast %50 : vector<4x16x1xf32> to vector<4x16x16xf32>
    %53 = vector.broadcast %51 : vector<4x1x16xf32> to vector<4x16x16xf32>
    %54 = arith.addf %52, %53 : vector<4x16x16xf32>
    %cst_20 = arith.constant 0.000000e+00 : f32
    %55 = vector.broadcast %cst_20 : f32 to vector<4x16x16xf32>
    %56 = arith.cmpf ogt, %54, %55 : vector<4x16x16xf32>
    %cst_21 = arith.constant 2.000000e-01 : f32
    %57 = vector.broadcast %cst_21 : f32 to vector<4x16x16xf32>
    %58 = arith.mulf %57, %54 : vector<4x16x16xf32>
    %59 = arith.select %56, %54, %58 : vector<4x16x16xi1>, vector<4x16x16xf32>
    %cst_22 = arith.constant -9.000000e+15 : f32
    %60 = vector.broadcast %cst_22 : f32 to vector<4x16x16xf32>
    %61 = arith.select %2, %59, %60 : vector<4x16x16xi1>, vector<4x16x16xf32>
    %cst_23 = arith.constant dense<0xFF800000> : vector<4x16xf32>
    %62 = vector.multi_reduction <maximumf>, %61, %cst_23 [2] : vector<4x16x16xf32> to vector<4x16xf32>
    %63 = vector.shape_cast %62 : vector<4x16xf32> to vector<4x16x1xf32>
    %64 = vector.broadcast %63 : vector<4x16x1xf32> to vector<4x16x16xf32>
    %65 = arith.subf %61, %64 : vector<4x16x16xf32>
    %66 = math.exp %65 : vector<4x16x16xf32>
    %cst_24 = arith.constant dense<0.000000e+00> : vector<4x16xf32>
    %67 = vector.multi_reduction <add>, %66, %cst_24 [2] : vector<4x16x16xf32> to vector<4x16xf32>
    %68 = vector.shape_cast %67 : vector<4x16xf32> to vector<4x16x1xf32>
    %69 = tpu.reciprocal %68 : vector<4x16x1xf32> -> vector<4x16x1xf32>
    %70 = vector.broadcast %69 : vector<4x16x1xf32> to vector<4x16x16xf32>
    %71 = arith.mulf %66, %70 : vector<4x16x16xf32>
    %72 = vector.extract_strided_slice %8 {offsets = [0, 0, 8], sizes = [4, 16, 8], strides = [1, 1, 1]} : vector<4x16x16xf32> to vector<4x16x8xf32>
    "tpu.trace_start"() <{level = 10 : i32, message = "bqk,bkd->bqd"}> : () -> ()
    %cst_25 = arith.constant dense<0.000000e+00> : vector<4x16x8xf32>
    %73 = tpu.matmul %71, %72, %cst_25 {dimension_numbers = #tpu.dot_dimension_numbers<[2], [1], [1], [2], [0, 0, 0, 1, 1, 2], [0], [0]>} : vector<4x16x16xf32>, vector<4x16x8xf32>, vector<4x16x8xf32> -> vector<4x16x8xf32>
    %cst_26 = arith.constant 0.000000e+00 : f32
    "tpu.trace_stop"() : () -> ()
    %74 = vector.broadcast %cst_26 : f32 to vector<4x16x8xf32>
    %75 = arith.cmpf ogt, %73, %74 : vector<4x16x8xf32>
    %cst_27 = arith.constant 0.000000e+00 : f32
    %76 = vector.broadcast %cst_27 : f32 to vector<4x16x8xf32>
    %77 = arith.minimumf %73, %76 : vector<4x16x8xf32>
    %78 = math.exp %77 : vector<4x16x8xf32>
    %cst_28 = arith.constant 1.000000e+00 : f32
    %79 = vector.broadcast %cst_28 : f32 to vector<4x16x8xf32>
    %80 = arith.subf %78, %79 : vector<4x16x8xf32>
    %81 = arith.select %75, %73, %80 : vector<4x16x8xi1>, vector<4x16x8xf32>
    %82 = vector.shape_cast %81 : vector<4x16x8xf32> to vector<64x8xf32>
    %83 = vector.extract_strided_slice %12 {offsets = [8, 0], sizes = [8, 1], strides = [1, 1]} : vector<16x1xf32> to vector<8x1xf32>
    %cst_29 = arith.constant dense<0.000000e+00> : vector<64x1xf32>
    %84 = tpu.matmul %82, %83, %cst_29 {dimension_numbers = #tpu.dot_dimension_numbers<[1], [0], [0], [1], [0, 0, 1, 1], [], []>} : vector<64x8xf32>, vector<8x1xf32>, vector<64x1xf32> -> vector<64x1xf32>
    %85 = arith.addf %49, %84 : vector<64x1xf32>
    %86 = vector.shape_cast %85 : vector<64x1xf32> to vector<4x16x1xf32>
    %c0_30 = arith.constant 0 : index
    %87 = memref.load %arg6[%c0_30] : memref<3xf32, #tpu.memory_space<smem>>
    %c1 = arith.constant 1 : index
    %88 = memref.load %arg6[%c1] : memref<3xf32, #tpu.memory_space<smem>>
    %89 = tpu.transpose %86, [0, 2, 1] : vector<4x16x1xf32> -> vector<4x1x16xf32>
    %90 = vector.broadcast %87 : f32 to vector<4x16x1xf32>
    %91 = arith.mulf %90, %86 : vector<4x16x1xf32>
    %92 = vector.broadcast %88 : f32 to vector<4x1x16xf32>
    %93 = arith.mulf %92, %89 : vector<4x1x16xf32>
    %94 = vector.broadcast %91 : vector<4x16x1xf32> to vector<4x16x16xf32>
    %95 = vector.broadcast %93 : vector<4x1x16xf32> to vector<4x16x16xf32>
    %96 = arith.addf %94, %95 : vector<4x16x16xf32>
    %cst_31 = arith.constant 0.000000e+00 : f32
    %97 = vector.broadcast %cst_31 : f32 to vector<4x16x16xf32>
    %98 = arith.cmpf ogt, %96, %97 : vector<4x16x16xf32>
    %cst_32 = arith.constant 2.000000e-01 : f32
    %99 = vector.broadcast %cst_32 : f32 to vector<4x16x16xf32>
    %100 = arith.mulf %99, %96 : vector<4x16x16xf32>
    %101 = arith.select %98, %96, %100 : vector<4x16x16xi1>, vector<4x16x16xf32>
    %cst_33 = arith.constant -9.000000e+15 : f32
    %102 = vector.broadcast %cst_33 : f32 to vector<4x16x16xf32>
    %103 = arith.select %2, %101, %102 : vector<4x16x16xi1>, vector<4x16x16xf32>
    %cst_34 = arith.constant dense<0xFF800000> : vector<4x16xf32>
    %104 = vector.multi_reduction <maximumf>, %103, %cst_34 [2] : vector<4x16x16xf32> to vector<4x16xf32>
    %105 = vector.shape_cast %104 : vector<4x16xf32> to vector<4x16x1xf32>
    %106 = vector.broadcast %105 : vector<4x16x1xf32> to vector<4x16x16xf32>
    %107 = arith.subf %103, %106 : vector<4x16x16xf32>
    %108 = math.exp %107 : vector<4x16x16xf32>
    %cst_35 = arith.constant dense<0.000000e+00> : vector<4x16xf32>
    %109 = vector.multi_reduction <add>, %108, %cst_35 [2] : vector<4x16x16xf32> to vector<4x16xf32>
    %110 = vector.shape_cast %109 : vector<4x16xf32> to vector<4x16x1xf32>
    %111 = tpu.reciprocal %110 : vector<4x16x1xf32> -> vector<4x16x1xf32>
    %112 = vector.broadcast %111 : vector<4x16x1xf32> to vector<4x16x16xf32>
    %113 = arith.mulf %108, %112 : vector<4x16x16xf32>
    %114 = vector.broadcast %89 : vector<4x1x16xf32> to vector<4x16x16xf32>
    %115 = arith.mulf %113, %114 : vector<4x16x16xf32>
    %cst_36 = arith.constant dense<0.000000e+00> : vector<4x16xf32>
    %116 = vector.multi_reduction <add>, %115, %cst_36 [2] : vector<4x16x16xf32> to vector<4x16xf32>
    %117 = vector.shape_cast %116 : vector<4x16xf32> to vector<4x16x1xf32>
    %cst_37 = arith.constant 0.000000e+00 : f32
    %118 = vector.broadcast %cst_37 : f32 to vector<4x16x1xf32>
    %119 = arith.cmpf ogt, %117, %118 : vector<4x16x1xf32>
    %cst_38 = arith.constant 0.000000e+00 : f32
    %120 = vector.broadcast %cst_38 : f32 to vector<4x16x1xf32>
    %121 = arith.minimumf %117, %120 : vector<4x16x1xf32>
    %122 = math.exp %121 : vector<4x16x1xf32>
    %cst_39 = arith.constant 1.000000e+00 : f32
    %123 = vector.broadcast %cst_39 : f32 to vector<4x16x1xf32>
    %124 = arith.subf %122, %123 : vector<4x16x1xf32>
    %125 = arith.select %119, %117, %124 : vector<4x16x1xi1>, vector<4x16x1xf32>
    %126 = vector.shape_cast %125 : vector<4x16x1xf32> to vector<4x16xf32>
    %127 = tpu.transpose %126, [1, 0] : vector<4x16xf32> -> vector<16x4xf32>
    %c0_40 = arith.constant 0 : index
    %c0_41 = arith.constant 0 : index
    %128 = vector.load %arg5[%c0_40, %c0_41] : memref<1x16xf32, #tpu.memory_space<vmem>>, vector<1x16xf32>
    %cst_42 = arith.constant dense<0.000000e+00> : vector<1x4xf32>
    %129 = tpu.matmul %128, %127, %cst_42 {dimension_numbers = #tpu.dot_dimension_numbers<[1], [0], [0], [1], [0, 0, 1, 1], [], []>} : vector<1x16xf32>, vector<16x4xf32>, vector<1x4xf32> -> vector<1x4xf32>
    %c2 = arith.constant 2 : index
    %130 = memref.load %arg6[%c2] : memref<3xf32, #tpu.memory_space<smem>>
    %131 = vector.broadcast %130 : f32 to vector<1x4xf32>
    %132 = arith.addf %129, %131 : vector<1x4xf32>
    %c0_43 = arith.constant 0 : index
    %c0_44 = arith.constant 0 : index
    %c0_45 = arith.constant 0 : index
    %133 = vector.load %arg7[%c0_43, %c0_44, %c0_45] : memref<1x1x4xf32, #tpu.memory_space<vmem>>, vector<1x1x4xf32>
    %134 = vector.shape_cast %133 : vector<1x1x4xf32> to vector<1x4xf32>
    %135 = vector.shape_cast %132 : vector<1x4xf32> to vector<1x1x4xf32>
    tpu.vector_store %arg7[%c0_43, %c0_44, %c0_45], %135 {strides = array<i32>} : memref<1x1x4xf32, #tpu.memory_space<vmem>>, vector<1x1x4xf32>,
    return
  }
  func.func @transform_0(%arg0: i32) -> (i32, i32, i32) {
    %c0_i32 = arith.constant 0 : i32
    %c0_i32_0 = arith.constant 0 : i32
    %c0_i32_1 = arith.constant 0 : i32
    return %arg0, %c0_i32, %c0_i32_0 : i32, i32, i32
  }
  func.func @transform_1(%arg0: i32) -> (i32, i32, i32) {
    %c0_i32 = arith.constant 0 : i32
    %c0_i32_0 = arith.constant 0 : i32
    %c0_i32_1 = arith.constant 0 : i32
    return %arg0, %c0_i32, %c0_i32_0 : i32, i32, i32
  }
  func.func @transform_2(%arg0: i32) -> (i32, i32) {
    %c0_i32 = arith.constant 0 : i32
    %c0_i32_0 = arith.constant 0 : i32
    %c0_i32_1 = arith.constant 0 : i32
    return %c0_i32, %c0_i32_0 : i32, i32
  }
  func.func @transform_3(%arg0: i32) -> (i32, i32) {
    %c0_i32 = arith.constant 0 : i32
    %c0_i32_0 = arith.constant 0 : i32
    %c0_i32_1 = arith.constant 0 : i32
    return %c0_i32, %c0_i32_0 : i32, i32
  }
  func.func @transform_4(%arg0: i32) -> (i32, i32) {
    %c0_i32 = arith.constant 0 : i32
    %c0_i32_0 = arith.constant 0 : i32
    %c0_i32_1 = arith.constant 0 : i32
    return %c0_i32, %c0_i32_0 : i32, i32
  }
  func.func @transform_5(%arg0: i32) -> i32 {
    %c0_i32 = arith.constant 0 : i32
    %c0_i32_0 = arith.constant 0 : i32
    return %c0_i32 : i32
  }
  func.func @transform_6(%arg0: i32) -> (i32, i32, i32) {
    %c0_i32 = arith.constant 0 : i32
    %c0_i32_0 = arith.constant 0 : i32
    %c0_i32_1 = arith.constant 0 : i32
    return %arg0, %c0_i32, %c0_i32_0 : i32, i32, i32
  }
}

</mosaic_0001>

<bundles_post_ra>
// kernel: tpu_custom_call.1
= control target key start
LH: loop header
LB: loop body
LE: loop exit
PB: predicated region body
PF: predicated region fallthrough
CT: control target
= control target key end

     0   :  { %11 = vsyncpa [#allocation4], 0  ;;  %s4024_s0 = inlined_call_operand.vmem [shape: f32[8,16,8], index: 0, kind: input, shape index: {}]   ;;  %s4025_s1 = inlined_call_operand.vmem [shape: s8[8,16,16], index: 1, kind: input, shape index: {}]   ;;  %s4026_s2 = inlined_call_operand.vmem [shape: f32[8,20], index: 2, kind: input, shape index: {}]   ;;  %s4027_s3 = inlined_call_operand.vmem [shape: f32[16,1], index: 3, kind: input, shape index: {}]   ;;  %s4028_s4 = inlined_call_operand.vmem [shape: f32[1,16], index: 4, kind: input, shape index: {}]   ;;  %s4029_s5 = inlined_call_operand.vmem [shape: f32[3], index: 5, kind: input, shape index: {}]   ;;  %s4030_s6 = inlined_call_operand.hbm [shape: f32[2,1,4], index: 6, kind: output, shape index: {}]  }
   0x1   :  { %12 = vsyncpa [#allocation3], 0 }
   0x2   :  { %14 = vsyncpa [#allocation3 + $0x1], 0  ;;  %s3317_s21 = smov 0   ;;  %s3319_s22 = smov 0  }
   0x3   :  { %s3321_s23 = smov 0   ;;  %s3323_s24 = smov 0  }
   0x4 LB: > { %s3338_s25 = sadd.s32 4294967295, %s3271_s24   ;;  %s2665_s26 = sadd.s32 4294967294, %s3271_s24   ;;  %s3271_s24 = sphi %s3323_s24, %s4053_s24   ;;  %s3267_s23 = sphi %s3321_s23, %s4052_s23   ;;  %s3263_s22 = sphi %s3319_s22, %s4051_s22   ;;  %s3259_s21 = sphi %s3317_s21, %s4050_s21  }
   0x5   : > { %s3342_s27 = sadd.s32 1, %s3271_s24   ;;  %s163_s28 = sadd.s32 1, %s3267_s23 }
   0x6   : > { %s160_s29 = ssub.s32 %s3271_s24, %s3342_s27  ;;  %p173_p0 = scmp.ne.s32.totalorder %s3267_s23, %s3263_s22 }
   0x7   : > { %p161_p1 = scmp.eq.s32.totalorder %s160_s29, 0  ;;  %p174_p2 = scmp.eq.s32.totalorder %s3338_s25, 1 }
   0x8   : > { %p179_p3 = scmp.ne.s32.totalorder %s3263_s22, %s3259_s21  ;;  %p180_p4 = scmp.eq.s32.totalorder %s2665_s26, 1 }
   0x9   : > { %s3353_s30 = scalar_select %p161_p1, %s3267_s23, %s163_s28  }
   0xa   : > { %p3355_p5 = por %p174_p2, %p173_p0  ;;  %p3359_p6 = por %p180_p4, %p179_p3 }
   0xb   : > { %p2666_p7 = scmp.ge.s32.totalorder %s3271_s24, 1  ;;  %p187_p8 = scmp.lt.s32.totalorder %s3271_s24, 3 }
   0xc   : > { %p2968_p9 = scmp.eq.s32.totalorder %s3338_s25, 0  ;;  %s209_s12 = sshll.u32 %s4029_s5, 4  ;;  %s210_s12 = int_to_ptr.vmem [resolvable:$true] %s209_s12 }
   0xd   : > { %p3366_p10 = pnand %p2666_p7, %p187_p8  ;;  %s3190_s13 = scalar_lea.vmem %s210_s12, 16 }
   0xe   : > { %p3191_p13 = scmp.ne.s32.totalorder %s210_s12, %s3190_s13  ;;  %p3198_p3 = scmp.lt.s32.totalorder %s210_s12, %s210_s12 }
   0xf   : > { %p2960_p11 = pneg %p3366_p10  ;;  %p3199_p4 = scmp.lt.s32.totalorder %s3190_s13, %s3190_s13 }
  0x11   : > { %p2961_p12 = pnand %p2968_p9, %p2960_p11  ;;  %p3200_p7 = por %p3199_p4, %p3198_p3 }
  0x13   : > { %p3192_p0 = pneg %p2961_p12 }
  0x15   : > { %p3193_p1 = pnand %p3192_p0, %p3191_p13 }
  0x17   : > { %p3194_p2 = pneg %p3193_p1 }
  0x19   : > { %p3201_p8 = pnand %p3200_p7, %p3194_p2 }
  0x1b   : > { %3204 = shalt.err (!%p3201_p8)
}
  0x1c   : > { %s3273_s14 = smov [#allocation2]   ;;  %242 = sbr.rel (%p3366_p10) target bundleno = 2328 (0x918), region = 44 }
  0x1d   : > { %2963 = dma.vmem_to_smem (!%p2961_p12), %s210_s12, 16, %s3273_s14, [#allocation4]  }
  0x23   : > { %3250 = dma.done.wait (%p2968_p9), [#allocation4], 16  }
  0x24   : > { %3252 = vsyncadd (%p2968_p9), [#allocation4], 4294967280 }
  0x25   : > { %248 = sfence }
  0x26   : > { %v319_v0 = vld [vmem:[%s4026_s2] sm:$0xff]  ;;  %s2671_s17 = sshll.u32 %s3338_s25, 2  ;;  %v3274_v1 = vmov 16   ;;  %vm320_vm0 = vcmask 64512   ;;  %s3275_s28 = smov 112   ;;  %v3276_v15 = vmov 18   ;;  %v644_v48 = vlaneseq }
  0x27   : > { %2811 = vmatprep.subr.mxu1 %v319_v0  ;;  %p280_p11 = scmp.lt.s32.totalorder %s2671_s17, 7  ;;  %3011 = vset.pattern.permute.xlu1 %v3274_v1  ;;  %v3277_v47 = vmov 0   ;;  %vm724_vm7 = vcmask 130048   ;;  %s3278_s12 = smov 120  }
  0x28   : > { %2812 = vmatpush3.msra.mxu1 %v319_v0  ;;  %3013 = vset.pattern.permute.xlu0 %v3274_v1  ;;  %v3508_v51 = vshrl.u32 %v644_v48, 7 }
  0x29   : > { %s4055_s17 = smov (!%p280_p11, %s2671_s17), 7 }
  0x2a   : > { %s2748_s18 = sshll.u32 %s4055_s17, 4  ;;  %s2749_s29 = sshll.u32 %s4055_s17, 2  ;;  %v3513_v53 = vsub.s32 1, %v3508_v51  ;;  %v3516_v54 = vsub.s32 3, %v3508_v51 }
  0x2b   : > { %s284_s26 = scalar_lea.vmem %s4024_s0, %s2748_s18  ;;  %s3503_s11 = scalar_lea.vmem %s4025_s1, %s2749_s29 }
  0x2c   : > { %v311_v2 = vld [vmem:[%s284_s26] sm:$0xff]  ;;  %v312_v3 = vld [vmem:[%s284_s26 + $0x8] sm:$0xff]  ;;  %v313_v4 = vld [vmem:[%s284_s26 + $0x10] sm:$0xff]  ;;  %s2015_s17 = sld [smem:[#allocation2]]  ;;  %s2733_s18 = sld [smem:[#allocation2 + $0x1]] }
  0x2d   : > { %2813 = vmatprep.mubr.msk.f32.mxu1 %vm320_vm0, %v311_v2  ;;  %v314_v5 = vld [vmem:[%s284_s26 + $0x18] sm:$0xff]  ;;  %v315_v6 = vld [vmem:[%s284_s26 + $0x20] sm:$0xff]  ;;  %v316_v7 = vld [vmem:[%s284_s26 + $0x28] sm:$0xff]  ;;  %s2745_s29 = sshll.u32 %s3338_s25, 4  ;;  %s3281_s25 = smov [#allocation5]  }
  0x2e   : > { %2814 = vmatmul.mubr.msk.f32.vlgmr.msra.gmra.mrb[0].mxu1 %vm320_vm0, %v312_v3  ;;  %v317_v8 = vld [vmem:[%s284_s26 + $0x30] sm:$0xff]  ;;  %v318_v9 = vld [vmem:[%s284_s26 + $0x38] sm:$0xff]  ;;  %v296_v49 = vld [vmem:[%s3503_s11 + $0x2] sm:$0x3]  ;;  %s2742_s26 = sld [smem:[#allocation2 + $0x2]]  ;;  %s3982_s13 = scalar_lea.hbm %s4030_s6, %s2745_s29 }
  0x2f   : > { %2816 = vmatprep.mubr.msk.f32.mxu1 %vm320_vm0, %v313_v4  ;;  %v295_v50 = vld [vmem:[%s3503_s11] sm:$0x3]  ;;  %vm304_vm1 = vnez %v296_v49  ;;  %s3209_s16 = sshll.u32 %s3281_s25, 4  ;;  %s3210_s16 = int_to_ptr.vmem [resolvable:$false] %s3209_s16 }
  0x30   : > { %vm303_vm2 = vnez %v295_v50  ;;  %v693_v55 = vsel %vm304_vm1, 16843009, %v3277_v47 }
  0x31   : > { %v692_v56 = vsel %vm303_vm2, 16843009, %v3277_v47  ;;  %v701_v58 = vunpack.c.0.s8 %v693_v55 }
  0x32   : > { %2817 = vmatmul.mubr.msk.f32.gmra.mrb[2].mxu1 %vm320_vm0, %v314_v5  ;;  %v700_v59 = vunpack.c.0.s8 %v692_v56 }
  0x33   : > { %2819 = vmatprep.mubr.msk.f32.mxu1 %vm320_vm0, %v315_v6  ;;  %vm3522_vm3 = vcmp.ne.s32.totalorder %v701_v58, 0 }
  0x34   : > { %vm3526_vm4 = vcmp.ne.s32.totalorder %v700_v59, 0  ;;  %v300_v59 = vld [vmem:[%s3503_s11 + $0xa] sm:$0x3] }
  0x35   : > { %vm308_vm15 = vnez %v300_v59 }
  0x36   : > { %2820 = vmatmul.mubr.msk.f32.gmra.mrb[4].mxu1 %vm320_vm0, %v316_v7 }
  0x37   : > { %2822 = vmatprep.mubr.msk.f32.mxu1 %vm320_vm0, %v317_v8 }
  0x3a   : > { %2823 = vmatmul.mubr.msk.f32.gmra.mrb[6].mxu1 %vm320_vm0, %v318_v9 }
 0x101   : > { %v3403_v10 = vpop.f32.mrb[0].mxu1 }
 0x102   : > { %617 = vperm.xlu1 %3011, %v3403_v10   ;;  %460 = vrot.lane.b32.xlu0 %v3403_v10, %s3275_s28  ;;  %v3408_v11 = vpop.f32.mrb[1].mxu1 }
 0x103   : > { %v2914_v12 = vpack.c.bf16 %v3403_v10, %v3408_v11  ;;  %v3024_v13 = vpack.i.bf16 %v3403_v10, %v3408_v11 }
 0x105   : > { %2915 = vmatprep.subr.bf16.mxu1 %v2914_v12  ;;  %v3414_v14 = vpop.f32.mrb[2].mxu1 }
 0x106   : > { %3012 = vset.pattern.permute.xlu1 %v3276_v15  ;;  %458 = vrot.lane.b32.xlu0 %v3408_v11, %s3275_s28  ;;  %v3418_v16 = vpop.f32.mrb[3].mxu1 }
 0x107   : > { %2917 = vmatpush3.bf16.msra.mxu1 %v2914_v12  ;;  %1190 = vperm.xlu1 %3012, %v3403_v10   ;;  %v3423_v17 = vpack.c.bf16 %v3414_v14, %v3418_v16  ;;  %v3029_v18 = vpack.i.bf16 %v3414_v14, %v3418_v16 }
 0x109   : > { %2919 = vmatprep.subr.bf16.mxu1 %v3423_v17  ;;  %v3428_v19 = vpop.f32.mrb[4].mxu1 }
 0x10a   : > { %613 = vperm.xlu0 %3013, %v3408_v11   ;;  %v3431_v20 = vpop.f32.mrb[5].mxu1 }
 0x10b   : > { %464 = vrot.lane.b32.xlu1 %v3414_v14, %s3275_s28  ;;  %v3034_v21 = vpack.i.bf16 %v3428_v19, %v3431_v20  ;;  %v3439_v22 = vpack.c.bf16 %v3428_v19, %v3431_v20 }
 0x10d   : > { %v3441_v23 = vpop.f32.mrb[6].mxu1 }
 0x10e   : > { %3014 = vset.pattern.permute.xlu0 %v3276_v15  ;;  %v3443_v24 = vpop.f32.mrb[7].mxu1 }
 0x10f   : > { %1186 = vperm.xlu0 %3014, %v3408_v11   ;;  %1198 = vperm.xlu1 %3012, %v3414_v14   ;;  %v3039_v25 = vpack.i.bf16 %v3441_v23, %v3443_v24  ;;  %v3451_v26 = vpack.c.bf16 %v3441_v23, %v3443_v24 }
 0x113   : > { %3015 = vset.pattern.permute.xlu0 %v3274_v1  ;;  %462 = vrot.lane.b32.xlu1 %v3418_v16, %s3275_s28 }
 0x114   : > { %625 = vperm.xlu0 %3015, %v3414_v14   ;;  %3016 = vset.pattern.permute.xlu1 %v3274_v1 }
 0x117   : > { %621 = vperm.xlu1 %3016, %v3418_v16  }
 0x118   : > { %3017 = vset.pattern.permute.xlu0 %v3276_v15 }
 0x119   : > { %1194 = vperm.xlu0 %3017, %v3418_v16  }
 0x11b   : > { %468 = vrot.lane.b32.xlu1 %v3428_v19, %s3275_s28 }
 0x11c   : > { %3019 = vset.pattern.permute.xlu1 %v3276_v15 }
 0x11d   : > { %3018 = vset.pattern.permute.xlu0 %v3274_v1 }
 0x11e   : > { %633 = vperm.xlu0 %3018, %v3428_v19  }
 0x11f   : > { %1206 = vperm.xlu1 %3019, %v3428_v19  }
 0x122   : > { %466 = vrot.lane.b32.xlu0 %v3431_v20, %s3275_s28 }
 0x123   : > { %3020 = vset.pattern.permute.xlu1 %v3274_v1  ;;  %3021 = vset.pattern.permute.xlu0 %v3276_v15 }
 0x124   : > { %629 = vperm.xlu1 %3020, %v3431_v20  }
 0x126   : > { %1202 = vperm.xlu0 %3021, %v3431_v20  }
 0x128   : > { %472 = vrot.lane.b32.xlu1 %v3441_v23, %s3275_s28 }
 0x12a   : > { %470 = vrot.lane.b32.xlu0 %v3443_v24, %s3275_s28  ;;  %s277_s28 = sand.u32 1, %s3263_s22  }
 0x12b   : > { %s278_s9 = scalar_lea.vmem [#allocation5], %s277_s28  ;;  %s2574_s14 = scalar_lea.sflag [#allocation3], %s277_s28 }
 0x12c   : > { %641 = vperm.xlu1 %3020, %v3441_v23   ;;  %s2586_s10 = sshll.u32 %s278_s9, 4  ;;  %s3984_s10 = int_to_ptr.vmem [resolvable:$true] %s2586_s10 }
 0x12d   : > { %s3205_s15 = scalar_lea.vmem %s3984_s10, 16  ;;  %p3212_p13 = scmp.lt.s32.totalorder %s3984_s10, %s3210_s16 }
 0x12e   : > { %1210 = vperm.xlu0 %3021, %v3443_v24   ;;  %p3206_p9 = scmp.ne.s32.totalorder %s3984_s10, %s3205_s15 }
 0x130   : > { %3022 = vset.pattern.permute.xlu1 %v3276_v15  ;;  %p3207_p10 = pnand %p3206_p9, %p3355_p5 }
 0x131   : > { %1214 = vperm.xlu1 %3022, %v3441_v23  }
 0x132   : > { %p3208_p12 = pneg %p3207_p10 }
 0x135   : > { %3023 = vset.pattern.permute.xlu1 %v3274_v1 }
 0x136   : > { %637 = vperm.xlu1 %3023, %v3443_v24  }
 0x174   : > { %v461_v27 = vpop.permute.xlu0 %460 }
 0x178   : > { %v459_v28 = vpop.permute.xlu0 %458 }
 0x179   : > { %482 = vxpose.xlu0.b32.start [1/2] (short) (narrow) %v459_v28, 8 }
 0x17d   : > { %483 = vxpose.xlu0.b32.end [2/2] (short) (narrow) %v461_v27, 8 }
 0x181   : > { %v618_v29 = vpop.permute.xlu1 %617 }
 0x186   : > { %v3479_v30 = vpop.permute.xlu1 %1190 }
 0x189   : > { %v614_v31 = vpop.permute.xlu0 %613 }
 0x18a   : > { %v465_v32 = vpop.permute.xlu1 %464 }
 0x18e   : > { %v1187_v33 = vpop.permute.xlu0 %1186  ;;  %v3481_v34 = vpop.permute.xlu1 %1198 }
 0x192   : > { %v463_v35 = vpop.permute.xlu1 %462 }
 0x193   : > { %v3483_v36 = vpop.permute.xlu0 %625  ;;  %514 = vxpose.xlu1.b32.start [1/2] (short) (narrow) %v463_v35, 8  ;;  %v298_v35 = vld [vmem:[%s3503_s11 + $0x6] sm:$0x3] }
 0x194   : > { %vm306_vm10 = vnez %v298_v35 }
 0x195   : > { %v695_v49 = vsel %vm306_vm10, 16843009, %v3277_v47 }
 0x196   : > { %v3485_v37 = vpop.permute.xlu1 %621 }
 0x197   : > { %515 = vxpose.xlu1.b32.end [2/2] (short) (narrow) %v465_v32, 8 }
 0x198   : > { %v3487_v38 = vpop.permute.xlu0 %1194 }
 0x19a   : > { %v469_v39 = vpop.permute.xlu1 %468 }
 0x19d   : > { %v3489_v40 = vpop.permute.xlu0 %633 }
 0x19e   : > { %v3491_v41 = vpop.permute.xlu1 %1206 }
 0x1a1   : > { %v467_v42 = vpop.permute.xlu0 %466 }
 0x1a2   : > { %546 = vxpose.xlu0.b32.start [1/2] (short) (narrow) %v467_v42, 8 }
 0x1a3   : > { %v3495_v44 = vpop.permute.xlu1 %629 }
 0x1a5   : > { %v3493_v43 = vpop.permute.xlu0 %1202 }
 0x1a6   : > { %547 = vxpose.xlu0.b32.end [2/2] (short) (narrow) %v469_v39, 8 }
 0x1a7   : > { %v473_v46 = vpop.permute.xlu1 %472 }
 0x1a9   : > { %v471_v45 = vpop.permute.xlu0 %470 }
 0x1aa   : > { %578 = vxpose.xlu0.b32.start [1/2] (short) (narrow) %v471_v45, 8 }
 0x1ad   : > { %v3510_v52 = vpop.permute.xlu0 %1210 }
 0x1ae   : > { %579 = vxpose.xlu0.b32.end [2/2] (short) (narrow) %v473_v46, 8 }
 0x1b5   : > { %3044 = vset.pattern.permute.xlu1 %v3277_v47 }
 0x1d7   : > { %3045 = vset.pattern.permute.xlu0 %v3277_v47 }
 0x1f9   : > { %v498_v57 = vpop.trf.xlu0 }
 0x1fa   : > { %v647_v60 = vrot.slane %v498_v57, %v3513_v53  ;;  %v1220_v61 = vrot.slane %v498_v57, %v3516_v54  ;;  %v703_v57 = vunpack.c.0.s8 %v695_v49 }
 0x1fc   : > { %v660_v62 = vadd.f32 %v647_v60, %v614_v31  ;;  %v661_v63 = vadd.f32 %v647_v60, %v618_v29  ;;  %v1233_v0 = vadd.f32 %v1220_v61, %v1187_v33  ;;  %v3546_v29 = vpop.permute.xlu1 %641  ;;  %v297_v33 = vld [vmem:[%s3503_s11 + $0x4] sm:$0x3]  ;;  %vm3567_vm14 = vcmp.ne.s32.totalorder %v703_v57, 0 }
 0x1fd   : > { %vm305_vm9 = vnez %v297_v33  ;;  %v302_v33 = vld [vmem:[%s3503_s11 + $0xe] sm:$0x3] }
 0x1fe   : > { %vm669_vm5 = vcmp.gt.f32.partialorder %v661_v63, 0.0  ;;  %v677_v3 = vmul.f32 0.2, %v661_v63  ;;  %vm668_vm6 = vcmp.gt.f32.partialorder %v660_v62, 0.0  ;;  %v676_v4 = vmul.f32 0.2, %v660_v62 }
 0x1ff   : > { %vm1241_vm8 = vcmp.gt.f32.partialorder %v1233_v0, 0.0  ;;  %v1249_v5 = vmul.f32 0.2, %v1233_v0  ;;  %v694_v42 = vsel %vm305_vm9, 16843009, %v3277_v47 }
 0x200   : > { %v685_v6 = vsel %vm669_vm5, %v661_v63, %v677_v3  ;;  %v684_v7 = vsel %vm668_vm6, %v660_v62, %v676_v4  ;;  %v3550_v32 = vpop.permute.xlu1 %1214  ;;  %v702_v46 = vunpack.c.0.s8 %v694_v42  ;;  %v299_v63 = vld [vmem:[%s3503_s11 + $0x8] sm:$0x3]  ;;  %vm310_vm6 = vnez %v302_v33 }
 0x201   : > { %v3532_v8 = vsel %vm3522_vm3, %v685_v6, -9e+15  ;;  %v3536_v9 = vsel %vm3526_vm4, %v684_v7, -9e+15  ;;  %v1257_v12 = vsel %vm1241_vm8, %v1233_v0, %v1249_v5  ;;  %vm307_vm1 = vnez %v299_v63 }
 0x202   : > { %v728_v15 = vsel %vm724_vm7, %v3532_v8, -inf  ;;  %v725_v27 = vsel %vm724_vm7, %v3536_v9, -inf  ;;  %v3544_v28 = vsel %vm3526_vm4, %v1257_v12, -9e+15  ;;  %vm3561_vm11 = vcmp.ne.s32.totalorder %v702_v46, 0 }
 0x203   : > { %729 = vmax.xlane.f32.xlu0 %v728_v15  ;;  %726 = vmax.xlane.f32.xlu1 %v725_v27  ;;  %v1273_v31 = vsel %vm724_vm7, %v3544_v28, -inf  ;;  %v697_v12 = vsel %vm308_vm15, 16843009, %v3277_v47  ;;  %v696_v15 = vsel %vm307_vm1, 16843009, %v3277_v47 }
 0x204   : > { %v3554_v39 = vpop.permute.xlu1 %637  ;;  %v301_v27 = vld [vmem:[%s3503_s11 + $0xc] sm:$0x3] }
 0x205   : > { %vm309_vm5 = vnez %v301_v27 }
 0x206   : > { %v698_v63 = vsel %vm309_vm5, 16843009, %v3277_v47 }
 0x207   : > { %1274 = vmax.xlane.f32.xlu0 %v1273_v31 }
 0x213   : > { %v530_v45 = vpop.trf.xlu1 }
 0x214   : > { %v651_v50 = vrot.slane %v530_v45, %v3513_v53  ;;  %v1224_v6 = vrot.slane %v530_v45, %v3516_v54  ;;  %v704_v45 = vunpack.c.0.s8 %v696_v15 }
 0x216   : > { %v662_v55 = vadd.f32 %v651_v50, %v3485_v37  ;;  %v663_v56 = vadd.f32 %v651_v50, %v3483_v36  ;;  %v1234_v37 = vadd.f32 %v1220_v61, %v3479_v30  ;;  %v705_v30 = vunpack.c.0.s8 %v697_v12 }
 0x217   : > { %v1235_v35 = vadd.f32 %v1224_v6, %v3487_v38  ;;  %v1236_v50 = vadd.f32 %v1224_v6, %v3481_v34  ;;  %vm3600_vm9 = vcmp.ne.s32.totalorder %v704_v45, 0  ;;  %v699_v34 = vsel %vm310_vm6, 16843009, %v3277_v47 }
 0x218   : > { %vm670_vm12 = vcmp.gt.f32.partialorder %v662_v55, 0.0  ;;  %v678_v60 = vmul.f32 0.2, %v662_v55  ;;  %vm671_vm13 = vcmp.gt.f32.partialorder %v663_v56, 0.0  ;;  %v679_v62 = vmul.f32 0.2, %v663_v56 }
 0x219   : > { %v1250_v61 = vmul.f32 0.2, %v1234_v37  ;;  %vm1242_vm2 = vcmp.gt.f32.partialorder %v1234_v37, 0.0  ;;  %vm3593_vm8 = vcmp.ne.s32.totalorder %v705_v30, 0  ;;  %vm1243_vm10 = vcmp.gt.f32.partialorder %v1235_v35, 0.0 }
 0x21a   : > { %v686_v0 = vsel %vm670_vm12, %v662_v55, %v678_v60  ;;  %v687_v3 = vsel %vm671_vm13, %v663_v56, %v679_v62  ;;  %v1251_v60 = vmul.f32 0.2, %v1235_v35  ;;  %vm1244_vm15 = vcmp.gt.f32.partialorder %v1236_v50, 0.0 }
 0x21b   : > { %v3573_v36 = vsel %vm3561_vm11, %v686_v0, -9e+15  ;;  %v3581_v7 = vsel %vm3567_vm14, %v687_v3, -9e+15  ;;  %v1258_v56 = vsel %vm1242_vm2, %v1234_v37, %v1250_v61 }
 0x21c   : > { %v731_v5 = vsel %vm724_vm7, %v3573_v36, -inf  ;;  %v734_v31 = vsel %vm724_vm7, %v3581_v7, -inf  ;;  %v1259_v6 = vsel %vm1243_vm10, %v1235_v35, %v1251_v60 }
 0x21d   : > { %732 = vmax.xlane.f32.xlu1 %v731_v5  ;;  %v3627_v35 = vsel %vm3561_vm11, %v1259_v6, -9e+15 }
 0x221   : > { %735 = vmax.xlane.f32.xlu1 %v734_v31 }
 0x222   : > { %v562_v42 = vpop.trf.xlu0 }
 0x223   : > { %v655_v46 = vrot.slane %v562_v42, %v3513_v53  ;;  %v1228_v49 = vrot.slane %v562_v42, %v3516_v54 }
 0x225   : > { %v664_v57 = vadd.f32 %v655_v46, %v3495_v44  ;;  %v665_v38 = vadd.f32 %v655_v46, %v3489_v40  ;;  %v1237_v59 = vadd.f32 %v1228_v49, %v3493_v43  ;;  %v1238_v44 = vadd.f32 %v1228_v49, %v3491_v41 }
 0x226   : > { %v3609_v40 = vsel %vm3522_vm3, %v1258_v56, -9e+15  ;;  %v1252_v43 = vmul.f32 0.2, %v1236_v50  ;;  %v706_v41 = vunpack.c.0.s8 %v698_v63  ;;  %v707_v56 = vunpack.c.0.s8 %v699_v34 }
 0x227   : > { %vm673_vm12 = vcmp.gt.f32.partialorder %v665_v38, 0.0  ;;  %v681_v0 = vmul.f32 0.2, %v665_v38  ;;  %vm672_vm13 = vcmp.gt.f32.partialorder %v664_v57, 0.0  ;;  %v680_v3 = vmul.f32 0.2, %v664_v57 }
 0x228   : > { %v1253_v12 = vmul.f32 0.2, %v1237_v59  ;;  %vm1245_vm1 = vcmp.gt.f32.partialorder %v1237_v59, 0.0  ;;  %v1260_v42 = vsel %vm1244_vm15, %v1236_v50, %v1252_v43  ;;  %vm1246_vm2 = vcmp.gt.f32.partialorder %v1238_v44, 0.0 }
 0x229   : > { %v689_v37 = vsel %vm673_vm12, %v665_v38, %v681_v0  ;;  %v688_v5 = vsel %vm672_vm13, %v664_v57, %v680_v3  ;;  %v1254_v45 = vmul.f32 0.2, %v1238_v44  ;;  %v1276_v57 = vsel %vm724_vm7, %v3609_v40, -inf }
 0x22a   : > { %v594_v15 = vpop.trf.xlu0  ;;  %v3613_v47 = vsel %vm3593_vm8, %v689_v37, -9e+15  ;;  %v3617_v27 = vsel %vm3600_vm9, %v688_v5, -9e+15  ;;  %v1261_v49 = vsel %vm1245_vm1, %v1237_v59, %v1253_v12  ;;  %v1279_v38 = vsel %vm724_vm7, %v3627_v35, -inf }
 0x22b   : > { %v659_v31 = vrot.slane %v594_v15, %v3513_v53  ;;  %v1232_v30 = vrot.slane %v594_v15, %v3516_v54  ;;  %v740_v61 = vsel %vm724_vm7, %v3613_v47, -inf  ;;  %v737_v33 = vsel %vm724_vm7, %v3617_v27, -inf }
 0x22c   : > { %741 = vmax.xlane.f32.xlu0 %v740_v61  ;;  %738 = vmax.xlane.f32.xlu1 %v737_v33  ;;  %v3639_v50 = vsel %vm3567_vm14, %v1260_v42, -9e+15  ;;  %vm3645_vm6 = vcmp.ne.s32.totalorder %v706_v41, 0  ;;  %vm3662_vm13 = vcmp.ne.s32.totalorder %v707_v56, 0 }
 0x22d   : > { %v666_v53 = vadd.f32 %v659_v31, %v3554_v39  ;;  %v667_v54 = vadd.f32 %v659_v31, %v3546_v29  ;;  %v1240_v46 = vadd.f32 %v1232_v30, %v3550_v32  ;;  %v3643_v29 = vsel %vm3600_vm9, %v1261_v49, -9e+15 }
 0x22e   : > { %v1262_v32 = vsel %vm1246_vm2, %v1238_v44, %v1254_v45  ;;  %v1239_v59 = vadd.f32 %v1232_v30, %v3510_v52  ;;  %v1282_v3 = vsel %vm724_vm7, %v3639_v50, -inf  ;;  %v1285_v43 = vsel %vm724_vm7, %v3643_v29, -inf }
 0x22f   : > { %vm674_vm5 = vcmp.gt.f32.partialorder %v666_v53, 0.0  ;;  %v682_v60 = vmul.f32 0.2, %v666_v53  ;;  %v1256_v34 = vmul.f32 0.2, %v1240_v46  ;;  %vm1248_vm10 = vcmp.gt.f32.partialorder %v1240_v46, 0.0 }
 0x230   : > { %1277 = vmax.xlane.f32.xlu0 %v1276_v57  ;;  %1280 = vmax.xlane.f32.xlu1 %v1279_v38  ;;  %v683_v0 = vmul.f32 0.2, %v667_v54  ;;  %vm675_vm12 = vcmp.gt.f32.partialorder %v667_v54, 0.0  ;;  %v3656_v44 = vsel %vm3593_vm8, %v1262_v32, -9e+15  ;;  %vm1247_vm15 = vcmp.gt.f32.partialorder %v1239_v59, 0.0 }
 0x231   : > { %v690_v63 = vsel %vm674_vm5, %v666_v53, %v682_v60  ;;  %v1264_v5 = vsel %vm1248_vm10, %v1240_v46, %v1256_v34  ;;  %v1255_v12 = vmul.f32 0.2, %v1239_v59  ;;  %v1288_v15 = vsel %vm724_vm7, %v3656_v44, -inf }
 0x232   : > { %v3660_v52 = vsel %vm3645_vm6, %v690_v63, -9e+15  ;;  %v691_v6 = vsel %vm675_vm12, %v667_v54, %v683_v0  ;;  %v3672_v31 = vsel %vm3662_vm13, %v1264_v5, -9e+15 }
 0x233   : > { %v743_v41 = vsel %vm724_vm7, %v3660_v52, -inf  ;;  %v3676_v30 = vsel %vm3662_vm13, %v691_v6, -9e+15  ;;  %v1263_v61 = vsel %vm1247_vm15, %v1239_v59, %v1255_v12  ;;  %v1294_v33 = vsel %vm724_vm7, %v3672_v31, -inf }
 0x234   : > { %1283 = vmax.xlane.f32.xlu0 %v1282_v3  ;;  %1286 = vmax.xlane.f32.xlu1 %v1285_v43  ;;  %v746_v42 = vsel %vm724_vm7, %v3676_v30, -inf  ;;  %v3684_v45 = vsel %vm3645_vm6, %v1263_v61, -9e+15 }
 0x235   : > { %v1291_v53 = vsel %vm724_vm7, %v3684_v45, -inf }
 0x238   : > { %1289 = vmax.xlane.f32.xlu0 %v1288_v15  ;;  %744 = vmax.xlane.f32.xlu1 %v743_v41 }
 0x23c   : > { %1295 = vmax.xlane.f32.xlu0 %v1294_v33  ;;  %747 = vmax.xlane.f32.xlu1 %v746_v42 }
 0x240   : > { %1292 = vmax.xlane.f32.xlu1 %v1291_v53 }
 0x251   : > { %3025 = vrot.lane.b32.xlu1 %v3024_v13, %s3278_s12 }
 0x290   : > { %v727_v54 = vpop.xlane.xlu1 %726  ;;  %v730_v46 = vpop.xlane.xlu0 %729 }
 0x291   : > { %v749_v49 = vsub.f32 %v3536_v9, %v727_v54  ;;  %v750_v56 = vsub.f32 %v3532_v8, %v730_v46 }
 0x293   : > { %v757_v57 = vmul.f32 1.442695, %v749_v49  ;;  %v759_v38 = vmul.f32 1.442695, %v750_v56 }
 0x294   : > { %v1275_v60 = vpop.xlane.xlu0 %1274 }
 0x295   : > { %3046 = vpow2.f32 %v757_v57  ;;  %v1297_v32 = vsub.f32 %v3544_v28, %v1275_v60 }
 0x296   : > { %3048 = vpow2.f32 %v759_v38 }
 0x297   : > { %v1305_v59 = vmul.f32 1.442695, %v1297_v32 }
 0x299   : > { %3050 = vpow2.f32 %v1305_v59 }
 0x29f   : > { %v3695_v63 = vpop.eup %3046 }
 0x2a0   : > { %v3697_v34 = vpop.eup %3048  ;;  %v773_v10 = vsel %vm724_vm7, %v3695_v63, 0.0 }
 0x2a1   : > { %774 = vadd.xlane.f32.xlu1 %v773_v10  ;;  %v776_v11 = vsel %vm724_vm7, %v3697_v34, 0.0 }
 0x2a2   : > { %777 = vadd.xlane.f32.xlu0 %v776_v11 }
 0x2a3   : > { %v3703_v13 = vpop.eup %3050 }
 0x2a4   : > { %v1321_v8 = vsel %vm724_vm7, %v3703_v13, 0.0 }
 0x2a6   : > { %1322 = vadd.xlane.f32.xlu0 %v1321_v8 }
 0x2aa   : > { %v733_v9 = vpop.xlane.xlu1 %732 }
 0x2ab   : > { %v751_v28 = vsub.f32 %v3573_v36, %v733_v9 }
 0x2ad   : > { %v761_v0 = vmul.f32 1.442695, %v751_v28 }
 0x2ae   : > { %v736_v3 = vpop.xlane.xlu1 %735 }
 0x2af   : > { %3052 = vpow2.f32 %v761_v0  ;;  %v752_v41 = vsub.f32 %v3581_v7, %v736_v3 }
 0x2b1   : > { %v763_v49 = vmul.f32 1.442695, %v752_v41 }
 0x2b9   : > { %v3708_v43 = vpop.eup %3052  ;;  %v739_v5 = vpop.xlane.xlu1 %738 }
 0x2ba   : > { %v742_v6 = vpop.xlane.xlu0 %741  ;;  %v779_v12 = vsel %vm724_vm7, %v3708_v43, 0.0  ;;  %v753_v15 = vsub.f32 %v3617_v27, %v739_v5 }
 0x2bb   : > { %780 = vadd.xlane.f32.xlu1 %v779_v12  ;;  %v754_v27 = vsub.f32 %v3613_v47, %v742_v6 }
 0x2bc   : > { %v765_v53 = vmul.f32 1.442695, %v753_v15 }
 0x2bd   : > { %v1281_v61 = vpop.xlane.xlu1 %1280  ;;  %v767_v11 = vmul.f32 1.442695, %v754_v27 }
 0x2be   : > { %v1278_v33 = vpop.xlane.xlu0 %1277  ;;  %v1299_v42 = vsub.f32 %v3627_v35, %v1281_v61 }
 0x2bf   : > { %v1298_v36 = vsub.f32 %v3609_v40, %v1278_v33 }
 0x2c0   : > { %v1309_v54 = vmul.f32 1.442695, %v1299_v42 }
 0x2c1   : > { %v1307_v46 = vmul.f32 1.442695, %v1298_v36  ;;  %v1287_v56 = vpop.xlane.xlu1 %1286 }
 0x2c2   : > { %v1284_v57 = vpop.xlane.xlu0 %1283  ;;  %3054 = vpow2.f32 %v1309_v54  ;;  %v1301_v38 = vsub.f32 %v3643_v29, %v1287_v56 }
 0x2c3   : > { %v1300_v60 = vsub.f32 %v3639_v50, %v1284_v57  ;;  %3056 = vpow2.f32 %v1307_v46 }
 0x2c4   : > { %3058 = vpow2.f32 %v765_v53  ;;  %v1313_v7 = vmul.f32 1.442695, %v1301_v38 }
 0x2c5   : > { %3060 = vpow2.f32 %v763_v49  ;;  %v1311_v35 = vmul.f32 1.442695, %v1300_v60  ;;  %v745_v32 = vpop.xlane.xlu1 %744 }
 0x2c6   : > { %v1290_v40 = vpop.xlane.xlu0 %1289  ;;  %v755_v59 = vsub.f32 %v3660_v52, %v745_v32  ;;  %3062 = vpow2.f32 %v1313_v7 }
 0x2c7   : > { %3064 = vpow2.f32 %v1311_v35  ;;  %v1302_v8 = vsub.f32 %v3656_v44, %v1290_v40 }
 0x2c8   : > { %v769_v10 = vmul.f32 1.442695, %v755_v59 }
 0x2c9   : > { %v748_v29 = vpop.xlane.xlu1 %747  ;;  %v1315_v3 = vmul.f32 1.442695, %v1302_v8 }
 0x2ca   : > { %v756_v50 = vsub.f32 %v3676_v30, %v748_v29  ;;  %v1296_v9 = vpop.xlane.xlu0 %1295  ;;  %3066 = vpow2.f32 %v769_v10 }
 0x2cb   : > { %3068 = vpow2.f32 %v767_v11  ;;  %v1304_v52 = vsub.f32 %v3672_v31, %v1296_v9 }
 0x2cc   : > { %v3722_v28 = vpop.eup %3054  ;;  %v771_v0 = vmul.f32 1.442695, %v756_v50 }
 0x2cd   : > { %v3724_v47 = vpop.eup %3056  ;;  %v1293_v5 = vpop.xlane.xlu1 %1292  ;;  %v1327_v6 = vsel %vm724_vm7, %v3722_v28, 0.0  ;;  %v1319_v61 = vmul.f32 1.442695, %v1304_v52 }
 0x2ce   : > { %v3729_v12 = vpop.eup %3058  ;;  %v1303_v44 = vsub.f32 %v3684_v45, %v1293_v5  ;;  %1328 = vadd.xlane.f32.xlu1 %v1327_v6  ;;  %v1324_v30 = vsel %vm724_vm7, %v3724_v47, 0.0  ;;  %3070 = vpow2.f32 %v771_v0 }
 0x2cf   : > { %v3734_v15 = vpop.eup %3060  ;;  %1325 = vadd.xlane.f32.xlu0 %v1324_v30  ;;  %3072 = vpow2.f32 %v1315_v3  ;;  %v785_v33 = vsel %vm724_vm7, %v3729_v12, 0.0 }
 0x2d0   : > { %v1317_v41 = vmul.f32 1.442695, %v1303_v44  ;;  %v3738_v42 = vpop.eup %3062  ;;  %v782_v45 = vsel %vm724_vm7, %v3734_v15, 0.0 }
 0x2d1   : > { %v3026_v31 = vpop.permute.xlu1 %3025  ;;  %v3742_v54 = vpop.eup %3064  ;;  %v1333_v49 = vsel %vm724_vm7, %v3738_v42, 0.0 }
 0x2d2   : > { %v3028_v36 = vunpack.i.h.bf16 %v3026_v31  ;;  %v3027_v53 = vunpack.i.l.bf16 %v3026_v31  ;;  %786 = vadd.xlane.f32.xlu1 %v785_v33  ;;  %3074 = vpow2.f32 %v1317_v41  ;;  %v1330_v57 = vsel %vm724_vm7, %v3742_v54, 0.0 }
 0x2d3   : > { %783 = vadd.xlane.f32.xlu0 %v782_v45  ;;  %3076 = vpow2.f32 %v1319_v61 }
 0x2d4   : > { %v2930_v46 = vpack.c.bf16 %v3028_v36, %v3027_v53  ;;  %v3746_v56 = vpop.eup %3066 }
 0x2d5   : > { %v3750_v38 = vpop.eup %3068  ;;  %v791_v60 = vsel %vm724_vm7, %v3746_v56, 0.0 }
 0x2d6   : > { %1334 = vadd.xlane.f32.xlu1 %v1333_v49  ;;  %2931 = vmatprep.subr.bf16.mxu0 %v2930_v46  ;;  %v788_v27 = vsel %vm724_vm7, %v3750_v38, 0.0 }
 0x2d7   : > { %1331 = vadd.xlane.f32.xlu0 %v1330_v57  ;;  %2933 = vmatpush3.bf16.msra.mxu0 %v2930_v46 }
 0x2d8   : > { %v3754_v7 = vpop.eup %3070 }
 0x2d9   : > { %v3758_v35 = vpop.eup %3072  ;;  %v794_v32 = vsel %vm724_vm7, %v3754_v7, 0.0 }
 0x2da   : > { %792 = vadd.xlane.f32.xlu1 %v791_v60  ;;  %v1336_v59 = vsel %vm724_vm7, %v3758_v35, 0.0 }
 0x2db   : > { %789 = vadd.xlane.f32.xlu0 %v788_v27 }
 0x2dc   : > { %v3762_v40 = vpop.eup %3074 }
 0x2dd   : > { %v3766_v10 = vpop.eup %3076  ;;  %v1339_v11 = vsel %vm724_vm7, %v3762_v40, 0.0 }
 0x2de   : > { %795 = vadd.xlane.f32.xlu1 %v794_v32  ;;  %v1342_v8 = vsel %vm724_vm7, %v3766_v10, 0.0 }
 0x2df   : > { %1337 = vadd.xlane.f32.xlu0 %v1336_v59 }
 0x2e2   : > { %1340 = vadd.xlane.f32.xlu1 %v1339_v11 }
 0x2e3   : > { %1343 = vadd.xlane.f32.xlu0 %v1342_v8 }
 0x2f3   : > { %3035 = vrot.lane.b32.xlu1 %v3034_v21, %s3278_s12 }
 0x2f7   : > { %3040 = vrot.lane.b32.xlu1 %v3039_v25, %s3278_s12 }
 0x2f9   : > { %3030 = vrot.lane.b32.xlu0 %v3029_v18, %s3278_s12 }
 0x32e   : > { %v775_v29 = vpop.xlane.xlu1 %774 }
 0x32f   : > { %3078 = vrcp.f32 %v775_v29  ;;  %v778_v50 = vpop.xlane.xlu0 %777 }
 0x330   : > { %3080 = vrcp.f32 %v778_v50 }
 0x333   : > { %v1323_v9 = vpop.xlane.xlu0 %1322 }
 0x334   : > { %3082 = vrcp.f32 %v1323_v9 }
 0x339   : > { %v3079_v0 = vpop.eup %3078 }
 0x33a   : > { %v3081_v3 = vpop.eup %3080  ;;  %v805_v19 = vmul.f32 %v3079_v0, %v3695_v63 }
 0x33b   : > { %v806_v20 = vmul.f32 %v3081_v3, %v3697_v34 }
 0x33c   : > { %2829 = vmatprep.mubr.msk.f32.mxu1 %vm724_vm7, %v805_v19 }
 0x33d   : > { %2830 = vmatmul.mubr.msk.f32.vlgmr.msra.gmra.mrb[8].mxu1 %vm724_vm7, %v806_v20 }
 0x33e   : > { %v3083_v21 = vpop.eup %3082  ;;  %2921 = vmatpush3.bf16.msra.mxu1 %v3423_v17 }
 0x33f   : > { %2923 = vmatprep.subr.bf16.mxu1 %v3439_v22  ;;  %v1353_v14 = vmul.f32 %v3083_v21, %v3703_v13 }
 0x341   : > { %2857 = vmatprep.mubr.msk.f32.mxu0 %vm724_vm7, %v1353_v14 }
 0x348   : > { %v781_v16 = vpop.xlane.xlu1 %780 }
 0x349   : > { %3084 = vrcp.f32 %v781_v16 }
 0x353   : > { %v3085_v18 = vpop.eup %3084 }
 0x354   : > { %v807_v23 = vmul.f32 %v3085_v18, %v3708_v43 }
 0x356   : > { %2836 = vmatprep.mubr.msk.f32.mxu1 %vm724_vm7, %v807_v23 }
 0x35b   : > { %v1329_v24 = vpop.xlane.xlu1 %1328 }
 0x35c   : > { %v1326_v25 = vpop.xlane.xlu0 %1325 }
 0x35d   : > { %3086 = vrcp.f32 %v1326_v25 }
 0x35f   : > { %v787_v63 = vpop.xlane.xlu1 %786 }
 0x360   : > { %3088 = vrcp.f32 %v787_v63  ;;  %v784_v34 = vpop.xlane.xlu0 %783 }
 0x361   : > { %3090 = vrcp.f32 %v784_v34 }
 0x363   : > { %v1335_v17 = vpop.xlane.xlu1 %1334 }
 0x364   : > { %3092 = vrcp.f32 %v1335_v17  ;;  %v1332_v52 = vpop.xlane.xlu0 %1331 }
 0x367   : > { %v3087_v13 = vpop.eup %3086  ;;  %v793_v5 = vpop.xlane.xlu1 %792 }
 0x368   : > { %3094 = vrcp.f32 %v793_v5  ;;  %v790_v6 = vpop.xlane.xlu0 %789  ;;  %v1354_v44 = vmul.f32 %v3087_v13, %v3724_v47 }
 0x369   : > { %3096 = vrcp.f32 %v790_v6 }
 0x36a   : > { %v3089_v43 = vpop.eup %3088  ;;  %2858 = vmatmul.mubr.msk.f32.vlgmr.msra.gmra.mrb[0].mxu0 %vm724_vm7, %v1354_v44  ;;  %3098 = vrcp.f32 %v1329_v24 }
 0x36b   : > { %v3091_v30 = vpop.eup %3090  ;;  %v796_v41 = vpop.xlane.xlu1 %795  ;;  %v809_v61 = vmul.f32 %v3089_v43, %v3729_v12 }
 0x36c   : > { %v808_v31 = vmul.f32 %v3091_v30, %v3734_v15  ;;  %3100 = vrcp.f32 %v796_v41  ;;  %v1338_v33 = vpop.xlane.xlu0 %1337 }
 0x36d   : > { %3102 = vrcp.f32 %v1338_v33 }
 0x36e   : > { %v3093_v36 = vpop.eup %3092  ;;  %2837 = vmatmul.mubr.msk.f32.vlgmr.msra.gmra.mrb[10].mxu1 %vm724_vm7, %v808_v31  ;;  %3104 = vrcp.f32 %v1332_v52 }
 0x36f   : > { %2925 = vmatpush3.bf16.msra.mxu1 %v3439_v22  ;;  %2843 = vmatprep.mubr.msk.f32.mxu1 %vm724_vm7, %v809_v61  ;;  %v1341_v47 = vpop.xlane.xlu1 %1340  ;;  %v1357_v53 = vmul.f32 %v3093_v36, %v3738_v42 }
 0x370   : > { %2927 = vmatprep.subr.bf16.mxu1 %v3451_v26  ;;  %3106 = vrcp.f32 %v1341_v47  ;;  %v1344_v12 = vpop.xlane.xlu0 %1343 }
 0x371   : > { %2871 = vmatprep.mubr.msk.f32.mxu0 %vm724_vm7, %v1357_v53  ;;  %3108 = vrcp.f32 %v1344_v12 }
 0x372   : > { %v3095_v15 = vpop.eup %3094 }
 0x373   : > { %v3097_v45 = vpop.eup %3096  ;;  %v3036_v46 = vpop.permute.xlu1 %3035  ;;  %v811_v49 = vmul.f32 %v3095_v15, %v3746_v56 }
 0x374   : > { %v810_v57 = vmul.f32 %v3097_v45, %v3750_v38  ;;  %v3038_v22 = vunpack.i.h.bf16 %v3036_v46  ;;  %v3037_v60 = vunpack.i.l.bf16 %v3036_v46  ;;  %v3031_v27 = vpop.permute.xlu0 %3030  ;;  %v3099_v32 = vpop.eup %3098 }
 0x375   : > { %v3033_v59 = vunpack.i.h.bf16 %v3031_v27  ;;  %v3032_v42 = vunpack.i.l.bf16 %v3031_v27  ;;  %v1355_v19 = vmul.f32 %v3099_v32, %v3722_v28 }
 0x376   : > { %v3101_v11 = vpop.eup %3100  ;;  %v2938_v8 = vpack.c.bf16 %v3038_v22, %v3037_v60  ;;  %2844 = vmatmul.mubr.msk.f32.vlgmr.msra.gmra.mrb[12].mxu1 %vm724_vm7, %v810_v57 }
 0x377   : > { %v3103_v29 = vpop.eup %3102  ;;  %v812_v50 = vmul.f32 %v3101_v11, %v3754_v7  ;;  %v2934_v9 = vpack.c.bf16 %v3033_v59, %v3032_v42  ;;  %2929 = vmatpush3.bf16.msra.mxu1 %v3451_v26  ;;  %2850 = vmatprep.mubr.msk.f32.mxu1 %vm724_vm7, %v811_v49  ;;  %v3041_v56 = vpop.permute.xlu1 %3040 }
 0x378   : > { %v3043_v38 = vunpack.i.h.bf16 %v3041_v56  ;;  %v3042_v0 = vunpack.i.l.bf16 %v3041_v56  ;;  %2939 = vmatprep.subr.bf16.mxu0 %v2938_v8  ;;  %v3105_v3 = vpop.eup %3104  ;;  %v1358_v21 = vmul.f32 %v3103_v29, %v3758_v35  ;;  %v611_v35 = vld [vmem:[%s4027_s3 + $0x8] sm:$0xff] }
 0x379   : > { %2935 = vmatprep.subr.bf16.mxu1 %v2934_v9  ;;  %2941 = vmatpush3.bf16.msra.mxu0 %v2938_v8  ;;  %v1356_v7 = vmul.f32 %v3105_v3, %v3742_v54  ;;  %v610_v54 = vld [vmem:[%s4027_s3] sm:$0xff] }
 0x37a   : > { %v3107_v20 = vpop.eup %3106  ;;  %v2942_v14 = vpack.c.bf16 %v3043_v38, %v3042_v0  ;;  %2851 = vmatmul.mubr.msk.f32.vlgmr.msra.gmra.mrb[14].mxu1 %vm724_vm7, %v812_v50  ;;  %2881 = vmatprep.subr.mxu0 %v611_v35 }
 0x37b   : > { %2937 = vmatpush3.bf16.msra.mxu1 %v2934_v9  ;;  %2864 = vmatprep.mubr.msk.f32.mxu1 %vm724_vm7, %v1355_v19  ;;  %v1359_v26 = vmul.f32 %v3107_v20, %v3762_v40  ;;  %v3109_v16 = vpop.eup %3108 }
 0x37c   : > { %2872 = vmatmul.mubr.msk.f32.vlgmr.msra.gmra.mrb[2].mxu0 %vm724_vm7, %v1358_v21  ;;  %2943 = vmatprep.subr.bf16.mxu1 %v2942_v14  ;;  %v1360_v28 = vmul.f32 %v3109_v16, %v3766_v10 }
 0x37d   : > { %2882 = vmatpush3.msra.mxu0 %v611_v35 }
 0x37e   : > { %2865 = vmatmul.mubr.msk.f32.vlgmr.msra.gmra.mrb[16].mxu1 %vm724_vm7, %v1356_v7  ;;  %2895 = vmatprep.subr.mxu0 %v610_v54 }
 0x37f   : > { %2945 = vmatpush3.bf16.msra.mxu1 %v2942_v14  ;;  %2878 = vmatprep.mubr.msk.f32.mxu1 %vm724_vm7, %v1359_v26 }
 0x382   : > { %2879 = vmatmul.mubr.msk.f32.vlgmr.msra.gmra.mrb[18].mxu1 %vm724_vm7, %v1360_v28 }
 0x410   : > { %v3827_v40 = vpop.f32.mrb[8].mxu1 }
 0x411   : > { %v3829_v18 = vpop.f32.mrb[9].mxu1  ;;  %v1146_v29 = vmin.f32 %v3827_v40, 0.0 }
 0x412   : > { %v1145_v32 = vmin.f32 %v3829_v18, 0.0 }
 0x413   : > { %v1155_v3 = vmul.f32 1.442695, %v1146_v29 }
 0x414   : > { %v1153_v56 = vmul.f32 1.442695, %v1145_v32 }
 0x43d   : > { %v2859_v23 = vpop.f32.mrb[0].mxu0 }
 0x43e   : > { %v1718_v24 = vmin.f32 %v2859_v23, 0.0  ;;  %v1439_v10 = vpop.f32.mrb[1].mxu0  ;;  %vm1710_vm2 = vcmp.gt.f32.partialorder %v2859_v23, 0.0 }
 0x43f   : > { %v1717_v25 = vmin.f32 %v1439_v10, 0.0  ;;  %vm1709_vm1 = vcmp.gt.f32.partialorder %v1439_v10, 0.0 }
 0x440   : > { %v1727_v63 = vmul.f32 1.442695, %v1718_v24 }
 0x441   : > { %v1725_v34 = vmul.f32 1.442695, %v1717_v25  ;;  %v3831_v17 = vpop.f32.mrb[10].mxu1 }
 0x442   : > { %3110 = vpow2.f32 %v1727_v63  ;;  %v3833_v52 = vpop.f32.mrb[11].mxu1  ;;  %v1148_v0 = vmin.f32 %v3831_v17, 0.0 }
 0x443   : > { %3112 = vpow2.f32 %v1725_v34  ;;  %v1147_v38 = vmin.f32 %v3833_v52, 0.0 }
 0x444   : > { %v1159_v14 = vmul.f32 1.442695, %v1148_v0 }
 0x445   : > { %v1157_v20 = vmul.f32 1.442695, %v1147_v38 }
 0x449   : > { %v3835_v13 = vpop.f32.mrb[12].mxu1 }
 0x44a   : > { %v3837_v5 = vpop.f32.mrb[13].mxu1  ;;  %v1150_v26 = vmin.f32 %v3835_v13, 0.0 }
 0x44b   : > { %v1149_v19 = vmin.f32 %v3837_v5, 0.0 }
 0x44c   : > { %v3111_v6 = vpop.eup %3110  ;;  %v1163_v25 = vmul.f32 1.442695, %v1150_v26 }
 0x44d   : > { %v3113_v44 = vpop.eup %3112  ;;  %v2710_v43 = vadd.f32 -1.0, %v3111_v6  ;;  %v3839_v30 = vpop.f32.mrb[14].mxu1  ;;  %v1161_v16 = vmul.f32 1.442695, %v1149_v19 }
 0x44e   : > { %v2709_v41 = vadd.f32 -1.0, %v3113_v44  ;;  %v3841_v61 = vpop.f32.mrb[15].mxu1  ;;  %v1152_v34 = vmin.f32 %v3839_v30, 0.0 }
 0x44f   : > { %v3843_v31 = vpop.f32.mrb[2].mxu0  ;;  %v1750_v47 = vsel %vm1710_vm2, %v2859_v23, %v2710_v43  ;;  %v1151_v35 = vmin.f32 %v3841_v61, 0.0 }
 0x450   : > { %v3845_v33 = vpop.f32.mrb[3].mxu0  ;;  %v1749_v36 = vsel %vm1709_vm1, %v1439_v10, %v2709_v41  ;;  %v1722_v53 = vmin.f32 %v3843_v31, 0.0  ;;  %vm1714_vm15 = vcmp.gt.f32.partialorder %v3843_v31, 0.0 }
 0x451   : > { %v2866_v12 = vpop.f32.mrb[16].mxu1  ;;  %v1721_v15 = vmin.f32 %v3845_v33, 0.0  ;;  %2883 = vmatprep.mubr.msk.f32.mxu0 %vm320_vm0, %v1749_v36  ;;  %v1165_v44 = vmul.f32 1.442695, %v1151_v35  ;;  %vm1713_vm12 = vcmp.gt.f32.partialorder %v3845_v33, 0.0 }
 0x452   : > { %v1526_v45 = vpop.f32.mrb[17].mxu1  ;;  %2884 = vmatmul.mubr.msk.f32.vlgmr.msra.gmra.mrb[4].mxu0 %vm320_vm0, %v1750_v47  ;;  %v1720_v46 = vmin.f32 %v2866_v12, 0.0  ;;  %v1735_v22 = vmul.f32 1.442695, %v1722_v53  ;;  %vm1712_vm10 = vcmp.gt.f32.partialorder %v2866_v12, 0.0 }
 0x453   : > { %v1733_v49 = vmul.f32 1.442695, %v1721_v15  ;;  %2896 = vmatpush3.msra.mxu0 %v610_v54  ;;  %v1719_v57 = vmin.f32 %v1526_v45, 0.0  ;;  %vm1711_vm5 = vcmp.gt.f32.partialorder %v1526_v45, 0.0 }
 0x454   : > { %v1731_v60 = vmul.f32 1.442695, %v1720_v46  ;;  %v1167_v46 = vmul.f32 1.442695, %v1152_v34 }
 0x455   : > { %v3851_v27 = vpop.f32.mrb[18].mxu1  ;;  %3114 = vpow2.f32 %v1733_v49  ;;  %v1729_v59 = vmul.f32 1.442695, %v1719_v57 }
 0x456   : > { %v1724_v42 = vmin.f32 %v3851_v27, 0.0  ;;  %v1700_v11 = vpop.f32.mrb[19].mxu1  ;;  %3116 = vpow2.f32 %v1731_v60  ;;  %vm1716_vm2 = vcmp.gt.f32.partialorder %v3851_v27, 0.0 }
 0x457   : > { %v1723_v8 = vmin.f32 %v1700_v11, 0.0  ;;  %3118 = vpow2.f32 %v1729_v59  ;;  %vm1715_vm1 = vcmp.gt.f32.partialorder %v1700_v11, 0.0 }
 0x458   : > { %3120 = vpow2.f32 %v1735_v22  ;;  %v1739_v50 = vmul.f32 1.442695, %v1724_v42 }
 0x459   : > { %v1737_v9 = vmul.f32 1.442695, %v1723_v8 }
 0x45b   : > { %3122 = vpow2.f32 %v1737_v9 }
 0x45c   : > { %3124 = vpow2.f32 %v1739_v50 }
 0x45d   : > { %3126 = vpow2.f32 %v1153_v56 }
 0x45e   : > { %3128 = vpow2.f32 %v1155_v3 }
 0x45f   : > { %v3115_v21 = vpop.eup %3114  ;;  %3130 = vpow2.f32 %v1157_v20 }
 0x460   : > { %v3117_v7 = vpop.eup %3116  ;;  %v2713_v24 = vadd.f32 -1.0, %v3115_v21  ;;  %3132 = vpow2.f32 %v1159_v14 }
 0x461   : > { %v3119_v28 = vpop.eup %3118  ;;  %v2712_v54 = vadd.f32 -1.0, %v3117_v7  ;;  %3134 = vpow2.f32 %v1161_v16 }
 0x462   : > { %v3121_v23 = vpop.eup %3120  ;;  %v2711_v10 = vadd.f32 -1.0, %v3119_v28  ;;  %v1753_v53 = vsel %vm1713_vm12, %v3845_v33, %v2713_v24  ;;  %3136 = vpow2.f32 %v1163_v25  ;;  %vm1139_vm12 = vcmp.gt.f32.partialorder %v3833_v52, 0.0 }
 0x463   : > { %v2714_v43 = vadd.f32 -1.0, %v3121_v23  ;;  %v1752_v41 = vsel %vm1712_vm10, %v2866_v12, %v2712_v54  ;;  %3138 = vpow2.f32 %v1165_v44  ;;  %vm1138_vm10 = vcmp.gt.f32.partialorder %v3827_v40, 0.0 }
 0x464   : > { %v1751_v6 = vsel %vm1711_vm5, %v1526_v45, %v2711_v10  ;;  %3140 = vpow2.f32 %v1167_v46  ;;  %vm1137_vm5 = vcmp.gt.f32.partialorder %v3829_v18, 0.0  ;;  %v2154_v44 = vstv %s2733_s18 }
 0x465   : > { %v3123_v63 = vpop.eup %3122  ;;  %2886 = vmatprep.mubr.msk.f32.mxu0 %vm320_vm0, %v1751_v6  ;;  %v1754_v49 = vsel %vm1714_vm15, %v3843_v31, %v2714_v43  ;;  %vm1140_vm15 = vcmp.gt.f32.partialorder %v3831_v17, 0.0  ;;  %v3899_v43 = vsub.s32 0, %v3508_v51 }
 0x466   : > { %v3125_v36 = vpop.eup %3124  ;;  %v2715_v47 = vadd.f32 -1.0, %v3123_v63  ;;  %2887 = vmatmul.mubr.msk.f32.gmra.mrb[6].mxu0 %vm320_vm0, %v1752_v41 }
 0x467   : > { %v3127_v15 = vpop.eup %3126  ;;  %2889 = vmatprep.mubr.msk.f32.mxu0 %vm320_vm0, %v1753_v53  ;;  %v2716_v45 = vadd.f32 -1.0, %v3125_v36 }
 0x468   : > { %v3129_v57 = vpop.eup %3128  ;;  %v2693_v12 = vadd.f32 -1.0, %v3127_v15  ;;  %v1755_v22 = vsel %vm1715_vm1, %v1700_v11, %v2715_v47  ;;  %vm1141_vm1 = vcmp.gt.f32.partialorder %v3837_v5, 0.0 }
 0x469   : > { %v3131_v60 = vpop.eup %3130  ;;  %v2694_v32 = vadd.f32 -1.0, %v3129_v57  ;;  %v1756_v59 = vsel %vm1716_vm2, %v3851_v27, %v2716_v45  ;;  %vm1142_vm2 = vcmp.gt.f32.partialorder %v3835_v13, 0.0 }
 0x46a   : > { %2890 = vmatmul.mubr.msk.f32.gmra.mrb[8].mxu0 %vm320_vm0, %v1754_v49  ;;  %v3133_v33 = vpop.eup %3132  ;;  %v2695_v8 = vadd.f32 -1.0, %v3131_v60  ;;  %v1177_v31 = vsel %vm1137_vm5, %v3829_v18, %v2693_v12  ;;  %vm1143_vm5 = vcmp.gt.f32.partialorder %v3841_v61, 0.0 }
 0x46b   : > { %2892 = vmatprep.mubr.msk.f32.mxu0 %vm320_vm0, %v1755_v22  ;;  %v3135_v42 = vpop.eup %3134  ;;  %v1178_v11 = vsel %vm1138_vm10, %v3827_v40, %v2694_v32  ;;  %v2696_v29 = vadd.f32 -1.0, %v3133_v33  ;;  %vm1144_vm10 = vcmp.gt.f32.partialorder %v3839_v30, 0.0 }
 0x46c   : > { %v3137_v50 = vpop.eup %3136  ;;  %v2697_v9 = vadd.f32 -1.0, %v3135_v42  ;;  %v1179_v27 = vsel %vm1139_vm12, %v3833_v52, %v2695_v8 }
 0x46d   : > { %v3139_v56 = vpop.eup %3138  ;;  %v2698_v18 = vadd.f32 -1.0, %v3137_v50  ;;  %v1180_v38 = vsel %vm1140_vm15, %v3831_v17, %v2696_v29 }
 0x46e   : > { %2893 = vmatmul.mubr.msk.f32.gmra.mrb[10].mxu0 %vm320_vm0, %v1756_v59  ;;  %v3141_v40 = vpop.eup %3140  ;;  %v2699_v0 = vadd.f32 -1.0, %v3139_v56  ;;  %v1181_v3 = vsel %vm1141_vm1, %v3837_v5, %v2697_v9  ;;  %v2145_v5 = vstv %s2015_s17  ;;  %s3211_s17 = scalar_lea.vmem %s3210_s16, 32 }
 0x46f   : > { %2897 = vmatprep.mubr.msk.f32.mxu0 %vm320_vm0, %v1177_v31  ;;  %v2700_v52 = vadd.f32 -1.0, %v3141_v40  ;;  %v1182_v19 = vsel %vm1142_vm2, %v3835_v13, %v2698_v18  ;;  %p3213_p0 = scmp.lt.s32.totalorder %s3211_s17, %s3205_s15 }
 0x470   : > { %v1183_v20 = vsel %vm1143_vm5, %v3841_v61, %v2699_v0 }
 0x471   : > { %v1184_v17 = vsel %vm1144_vm10, %v3839_v30, %v2700_v52  ;;  %p3214_p1 = por %p3213_p0, %p3212_p13 }
 0x472   : > { %2898 = vmatmul.mubr.msk.f32.vlgmr.msra.gmra.mrb[4].mxu0 %vm320_vm0, %v1178_v11 }
 0x473   : > { %2900 = vmatprep.mubr.msk.f32.mxu0 %vm320_vm0, %v1179_v27  ;;  %p3215_p2 = pnand %p3214_p1, %p3208_p12 }
 0x476   : > { %2901 = vmatmul.mubr.msk.f32.gmra.mrb[6].mxu0 %vm320_vm0, %v1180_v38 }
 0x477   : > { %2903 = vmatprep.mubr.msk.f32.mxu0 %vm320_vm0, %v1181_v3 }
 0x47a   : > { %2904 = vmatmul.mubr.msk.f32.gmra.mrb[8].mxu0 %vm320_vm0, %v1182_v19 }
 0x47b   : > { %2906 = vmatprep.mubr.msk.f32.mxu0 %vm320_vm0, %v1183_v20 }
 0x47e   : > { %2907 = vmatmul.mubr.msk.f32.gmra.mrb[10].mxu0 %vm320_vm0, %v1184_v17 }
 0x545   : > { %v2899_v21 = vpop.f32.mrb[4].mxu0 }
 0x546   : > { %v2147_v14 = vmul.f32 %v2899_v21, %v2145_v5  ;;  %v1976_v26 = vpop.f32.mrb[5].mxu0 }
 0x547   : > { %v2146_v7 = vmul.f32 %v2145_v5, %v1976_v26 }
 0x548   : > { %2166 = vperm.xlu1 %3044, %v2147_v14  }
 0x549   : > { %2161 = vperm.xlu0 %3045, %v2146_v7   ;;  %v2902_v13 = vpop.f32.mrb[6].mxu0 }
 0x54a   : > { %v2149_v16 = vmul.f32 %v2902_v13, %v2145_v5  ;;  %v1986_v28 = vpop.f32.mrb[7].mxu0 }
 0x54b   : > { %v2148_v61 = vmul.f32 %v2145_v5, %v1986_v28 }
 0x54d   : > { %2176 = vperm.xlu0 %3045, %v2149_v16   ;;  %v2905_v35 = vpop.f32.mrb[8].mxu0 }
 0x54e   : > { %v2151_v54 = vmul.f32 %v2905_v35, %v2145_v5  ;;  %v1996_v23 = vpop.f32.mrb[9].mxu0 }
 0x54f   : > { %v2150_v24 = vmul.f32 %v2145_v5, %v1996_v23 }
 0x551   : > { %v2908_v30 = vpop.f32.mrb[10].mxu0 }
 0x552   : > { %v2153_v10 = vmul.f32 %v2908_v30, %v2145_v5  ;;  %v2006_v25 = vpop.f32.mrb[11].mxu0 }
 0x553   : > { %v2152_v63 = vmul.f32 %v2145_v5, %v2006_v25 }
 0x56b   : > { %2049 = vxpose.xlu0.b32.start [1/2] (short) (narrow) %v1986_v28, 8 }
 0x56f   : > { %2050 = vxpose.xlu0.b32.end [2/2] (short) (narrow) %v2902_v13, 8 }
 0x571   : > { %2017 = vxpose.xlu1.b32.start [1/2] (short) (narrow) %v1976_v26, 8 }
 0x575   : > { %2018 = vxpose.xlu1.b32.end [2/2] (short) (narrow) %v2899_v21, 8 }
 0x593   : > { %2171 = vperm.xlu1 %3044, %v2148_v61  }
 0x597   : > { %2181 = vperm.xlu1 %3044, %v2150_v24  }
 0x598   : > { %2186 = vperm.xlu0 %3045, %v2151_v54  }
 0x59b   : > { %2191 = vperm.xlu1 %3044, %v2152_v63  }
 0x59c   : > { %2196 = vperm.xlu0 %3045, %v2153_v10  }
 0x5ba   : > { %2081 = vxpose.xlu0.b32.start [1/2] (short) (narrow) %v1996_v23, 8 }
 0x5be   : > { %2082 = vxpose.xlu0.b32.end [2/2] (short) (narrow) %v2905_v35, 8 }
 0x5c4   : > { %2113 = vxpose.xlu1.b32.start [1/2] (short) (narrow) %v2006_v25, 8 }
 0x5c7   : > { %v2167_v47 = vpop.permute.xlu1 %2166 }
 0x5c8   : > { %2114 = vxpose.xlu1.b32.end [2/2] (short) (narrow) %v2908_v30, 8  ;;  %v2162_v34 = vpop.permute.xlu0 %2161 }
 0x5cc   : > { %v2177_v6 = vpop.permute.xlu0 %2176 }
 0x5eb   : > { %v3901_v41 = vpop.trf.xlu0 }
 0x5ec   : > { %v2156_v36 = vmul.f32 %v2154_v44, %v3901_v41 }
 0x5ee   : > { %v2206_v53 = vrot.slane %v2156_v36, %v3899_v43 }
 0x5f0   : > { %v2218_v46 = vadd.f32 %v2206_v53, %v2177_v6 }
 0x5f1   : > { %v3905_v15 = vpop.trf.xlu1 }
 0x5f2   : > { %v2155_v45 = vmul.f32 %v2154_v44, %v3905_v15  ;;  %v2234_v22 = vmul.f32 0.2, %v2218_v46  ;;  %vm2226_vm0 = vcmp.gt.f32.partialorder %v2218_v46, 0.0 }
 0x5f4   : > { %v2202_v49 = vrot.slane %v2155_v45, %v3899_v43  ;;  %v2242_v42 = vsel %vm2226_vm0, %v2218_v46, %v2234_v22  ;;  %vm2461_vm0 = vcmask 130112  }
 0x5f5   : > { %v2250_v50 = vsel %vm3567_vm14, %v2242_v42, -9e+15 }
 0x5f6   : > { %v2215_v57 = vadd.f32 %v2202_v49, %v2162_v34  ;;  %v2216_v12 = vadd.f32 %v2202_v49, %v2167_v47  ;;  %v2264_v9 = vsel %vm724_vm7, %v2250_v50, -inf }
 0x5f8   : > { %vm2223_vm12 = vcmp.gt.f32.partialorder %v2215_v57, 0.0  ;;  %v2231_v60 = vmul.f32 0.2, %v2215_v57  ;;  %vm2224_vm15 = vcmp.gt.f32.partialorder %v2216_v12, 0.0  ;;  %v2232_v33 = vmul.f32 0.2, %v2216_v12 }
 0x5fa   : > { %v2239_v32 = vsel %vm2223_vm12, %v2215_v57, %v2231_v60  ;;  %v2240_v59 = vsel %vm2224_vm15, %v2216_v12, %v2232_v33 }
 0x5fb   : > { %v2247_v8 = vsel %vm3526_vm4, %v2239_v32, -9e+15  ;;  %v2248_v31 = vsel %vm3522_vm3, %v2240_v59, -9e+15 }
 0x5fc   : > { %v2255_v11 = vsel %vm724_vm7, %v2247_v8, -inf  ;;  %v2258_v29 = vsel %vm724_vm7, %v2248_v31, -inf }
 0x5fd   : > { %2256 = vmax.xlane.f32.xlu0 %v2255_v11  ;;  %2259 = vmax.xlane.f32.xlu1 %v2258_v29 }
 0x601   : > { %2265 = vmax.xlane.f32.xlu1 %v2264_v9 }
 0x612   : > { %v2172_v27 = vpop.permute.xlu1 %2171 }
 0x613   : > { %v2217_v56 = vadd.f32 %v2206_v53, %v2172_v27 }
 0x615   : > { %v2233_v18 = vmul.f32 0.2, %v2217_v56  ;;  %vm2225_vm1 = vcmp.gt.f32.partialorder %v2217_v56, 0.0 }
 0x616   : > { %v2182_v4 = vpop.permute.xlu1 %2181 }
 0x617   : > { %v2241_v2 = vsel %vm2225_vm1, %v2217_v56, %v2233_v18  ;;  %v2187_v40 = vpop.permute.xlu0 %2186  ;;  %vm2490_vm1 = vcmask 1041409  }
 0x618   : > { %v3920_v1 = vsel %vm3561_vm11, %v2241_v2, -9e+15 }
 0x619   : > { %v2261_v38 = vsel %vm724_vm7, %v3920_v1, -inf }
 0x61a   : > { %2262 = vmax.xlane.f32.xlu0 %v2261_v38  ;;  %v2192_v5 = vpop.permute.xlu1 %2191 }
 0x61b   : > { %v2197_v0 = vpop.permute.xlu0 %2196 }
 0x63a   : > { %v3924_v3 = vpop.trf.xlu0 }
 0x63b   : > { %v2157_v52 = vmul.f32 %v2154_v44, %v3924_v3 }
 0x63d   : > { %v2210_v19 = vrot.slane %v2157_v52, %v3899_v43 }
 0x63f   : > { %v2219_v20 = vadd.f32 %v2210_v19, %v2182_v4  ;;  %v2220_v17 = vadd.f32 %v2210_v19, %v2187_v40 }
 0x641   : > { %vm2227_vm3 = vcmp.gt.f32.partialorder %v2219_v20, 0.0  ;;  %v2235_v58 = vmul.f32 0.2, %v2219_v20  ;;  %vm2228_vm4 = vcmp.gt.f32.partialorder %v2220_v17, 0.0  ;;  %v2236_v21 = vmul.f32 0.2, %v2220_v17 }
 0x643   : > { %v2243_v14 = vsel %vm2227_vm3, %v2219_v20, %v2235_v58  ;;  %v2244_v26 = vsel %vm2228_vm4, %v2220_v17, %v2236_v21  ;;  %vm2492_vm3 = vcmask 1042434   ;;  %vm2494_vm4 = vcmask 1043459  }
 0x644   : > { %v3928_v7 = vpop.trf.xlu1  ;;  %v2251_v13 = vsel %vm3600_vm9, %v2243_v14, -9e+15  ;;  %v2252_v16 = vsel %vm3593_vm8, %v2244_v26, -9e+15  ;;  %vm3280_vm8 = vmmov 0  }
 0x645   : > { %v2158_v28 = vmul.f32 %v2154_v44, %v3928_v7  ;;  %v2267_v61 = vsel %vm724_vm7, %v2251_v13, -inf  ;;  %v2270_v35 = vsel %vm724_vm7, %v2252_v16, -inf }
 0x646   : > { %2268 = vmax.xlane.f32.xlu0 %v2267_v61  ;;  %2271 = vmax.xlane.f32.xlu1 %v2270_v35  ;;  %v2346_v35 = vrot.slane %v3905_v15, %v3899_v43 }
 0x647   : > { %v2214_v54 = vrot.slane %v2158_v28, %v3899_v43 }
 0x649   : > { %v2221_v23 = vadd.f32 %v2214_v54, %v2192_v5  ;;  %v2222_v24 = vadd.f32 %v2214_v54, %v2197_v0 }
 0x64b   : > { %vm2230_vm11 = vcmp.gt.f32.partialorder %v2222_v24, 0.0  ;;  %v2238_v30 = vmul.f32 0.2, %v2222_v24  ;;  %vm2229_vm14 = vcmp.gt.f32.partialorder %v2221_v23, 0.0  ;;  %v2237_v62 = vmul.f32 0.2, %v2221_v23 }
 0x64d   : > { %v2246_v10 = vsel %vm2230_vm11, %v2222_v24, %v2238_v30  ;;  %v2245_v25 = vsel %vm2229_vm14, %v2221_v23, %v2237_v62  ;;  %vm2571_vm11 = vcmask 24576  }
 0x64e   : > { %v2254_v55 = vsel %vm3662_vm13, %v2246_v10, -9e+15  ;;  %v2253_v63 = vsel %vm3645_vm6, %v2245_v25, -9e+15  ;;  %v2350_v25 = vrot.slane %v3901_v41, %v3899_v43 }
 0x64f   : > { %v2276_v34 = vsel %vm724_vm7, %v2254_v55, -inf  ;;  %v2273_v6 = vsel %vm724_vm7, %v2253_v63, -inf }
 0x650   : > { %2277 = vmax.xlane.f32.xlu1 %v2276_v34  ;;  %2274 = vmax.xlane.f32.xlu0 %v2273_v6 }
 0x68a   : > { %v2257_v44 = vpop.xlane.xlu0 %2256  ;;  %v2260_v36 = vpop.xlane.xlu1 %2259 }
 0x68b   : > { %v2279_v47 = vsub.f32 %v2247_v8, %v2257_v44  ;;  %v2280_v53 = vsub.f32 %v2248_v31, %v2260_v36 }
 0x68d   : > { %v2287_v46 = vmul.f32 1.442695, %v2279_v47  ;;  %v2289_v45 = vmul.f32 1.442695, %v2280_v53 }
 0x68e   : > { %v2266_v49 = vpop.xlane.xlu1 %2265 }
 0x68f   : > { %3142 = vpow2.f32 %v2287_v46  ;;  %v2282_v57 = vsub.f32 %v2250_v50, %v2266_v49 }
 0x690   : > { %3144 = vpow2.f32 %v2289_v45 }
 0x691   : > { %v2293_v37 = vmul.f32 1.442695, %v2282_v57 }
 0x693   : > { %3146 = vpow2.f32 %v2293_v37 }
 0x699   : > { %v3143_v39 = vpop.eup %3142 }
 0x69a   : > { %v3145_v12 = vpop.eup %3144  ;;  %v2303_v22 = vsel %vm724_vm7, %v3143_v39, 0.0 }
 0x69b   : > { %2304 = vadd.xlane.f32.xlu0 %v2303_v22  ;;  %v2306_v60 = vsel %vm724_vm7, %v3145_v12, 0.0 }
 0x69c   : > { %2307 = vadd.xlane.f32.xlu1 %v2306_v60 }
 0x69d   : > { %v3147_v33 = vpop.eup %3146 }
 0x69e   : > { %v2312_v32 = vsel %vm724_vm7, %v3147_v33, 0.0 }
 0x6a0   : > { %2313 = vadd.xlane.f32.xlu1 %v2312_v32 }
 0x6a7   : > { %v2263_v59 = vpop.xlane.xlu0 %2262 }
 0x6a8   : > { %v2281_v42 = vsub.f32 %v3920_v1, %v2263_v59 }
 0x6aa   : > { %v2291_v8 = vmul.f32 1.442695, %v2281_v42 }
 0x6ac   : > { %3148 = vpow2.f32 %v2291_v8 }
 0x6b6   : > { %v3149_v31 = vpop.eup %3148 }
 0x6b7   : > { %v2309_v11 = vsel %vm724_vm7, %v3149_v31, 0.0 }
 0x6b8   : > { %2310 = vadd.xlane.f32.xlu0 %v2309_v11 }
 0x6d3   : > { %v2269_v29 = vpop.xlane.xlu0 %2268  ;;  %v2272_v50 = vpop.xlane.xlu1 %2271 }
 0x6d4   : > { %v2283_v9 = vsub.f32 %v2251_v13, %v2269_v29  ;;  %v2284_v27 = vsub.f32 %v2252_v16, %v2272_v50 }
 0x6d6   : > { %v2295_v56 = vmul.f32 1.442695, %v2283_v9  ;;  %v2297_v18 = vmul.f32 1.442695, %v2284_v27 }
 0x6d8   : > { %3150 = vpow2.f32 %v2295_v56  ;;  %v3279_v56 = vmov 0.0  }
 0x6d9   : > { %3152 = vpow2.f32 %v2297_v18  ;;  %2909 = vmatprep.subr.mxu1 %v3279_v56  ;;  %2911 = vmatprep.mubr.msk.f32.mxu1 %vm3280_vm8, %v3279_v56 }
 0x6dd   : > { %v2275_v2 = vpop.xlane.xlu0 %2274  ;;  %v2278_v38 = vpop.xlane.xlu1 %2277 }
 0x6de   : > { %v2285_v40 = vsub.f32 %v2253_v63, %v2275_v2  ;;  %v2286_v0 = vsub.f32 %v2254_v55, %v2278_v38 }
 0x6e0   : > { %v2299_v4 = vmul.f32 1.442695, %v2285_v40  ;;  %v2301_v1 = vmul.f32 1.442695, %v2286_v0 }
 0x6e2   : > { %v3151_v52 = vpop.eup %3150  ;;  %3154 = vpow2.f32 %v2299_v4 }
 0x6e3   : > { %v3153_v19 = vpop.eup %3152  ;;  %3156 = vpow2.f32 %v2301_v1  ;;  %v2315_v20 = vsel %vm724_vm7, %v3151_v52, 0.0 }
 0x6e4   : > { %2316 = vadd.xlane.f32.xlu0 %v2315_v20  ;;  %v2318_v17 = vsel %vm724_vm7, %v3153_v19, 0.0 }
 0x6e5   : > { %2319 = vadd.xlane.f32.xlu1 %v2318_v17 }
 0x6ec   : > { %v3155_v5 = vpop.eup %3154 }
 0x6ed   : > { %v3157_v58 = vpop.eup %3156  ;;  %v2321_v21 = vsel %vm724_vm7, %v3155_v5, 0.0 }
 0x6ee   : > { %2322 = vadd.xlane.f32.xlu0 %v2321_v21  ;;  %v2324_v14 = vsel %vm724_vm7, %v3157_v58, 0.0 }
 0x6ef   : > { %2325 = vadd.xlane.f32.xlu1 %v2324_v14 }
 0x728   : > { %v2305_v26 = vpop.xlane.xlu0 %2304 }
 0x729   : > { %3158 = vrcp.f32 %v2305_v26  ;;  %v2308_v13 = vpop.xlane.xlu1 %2307 }
 0x72a   : > { %3160 = vrcp.f32 %v2308_v13 }
 0x72d   : > { %v2314_v16 = vpop.xlane.xlu1 %2313 }
 0x72e   : > { %3162 = vrcp.f32 %v2314_v16 }
 0x733   : > { %v3159_v28 = vpop.eup %3158 }
 0x734   : > { %v3161_v61 = vpop.eup %3160  ;;  %v2335_v54 = vmul.f32 %v3159_v28, %v3143_v39  ;;  %v2354_v39 = vrot.slane %v3924_v3, %v3899_v43 }
 0x735   : > { %v2336_v23 = vmul.f32 %v3161_v61, %v3145_v12 }
 0x736   : > { %v2359_v24 = vmul.f32 %v2346_v35, %v2335_v54  ;;  %v2451_v54 = vand.u32 127, %v644_v48 }
 0x737   : > { %v2360_v30 = vmul.f32 %v2346_v35, %v2336_v23 }
 0x738   : > { %v3163_v62 = vpop.eup %3162  ;;  %v2367_v10 = vsel %vm724_vm7, %v2359_v24, 0.0 }
 0x739   : > { %2368 = vadd.xlane.f32.xlu0 %v2367_v10  ;;  %v2370_v55 = vsel %vm724_vm7, %v2360_v30, 0.0  ;;  %v2338_v63 = vmul.f32 %v3163_v62, %v3147_v33 }
 0x73a   : > { %2371 = vadd.xlane.f32.xlu1 %v2370_v55 }
 0x73b   : > { %v2362_v34 = vmul.f32 %v2350_v25, %v2338_v63  ;;  %v2456_v63 = vadd.s32 4294967288, %v2451_v54 }
 0x73d   : > { %v2376_v6 = vsel %vm724_vm7, %v2362_v34, 0.0  ;;  %v2459_v48 = vsub.s32 %v2456_v63, %v3508_v51 }
 0x73e   : > { %2377 = vadd.xlane.f32.xlu1 %v2376_v6 }
 0x745   : > { %v2311_v15 = vpop.xlane.xlu0 %2310 }
 0x746   : > { %3164 = vrcp.f32 %v2311_v15 }
 0x750   : > { %v3165_v44 = vpop.eup %3164 }
 0x751   : > { %v2337_v36 = vmul.f32 %v3165_v44, %v3149_v31  ;;  %v2358_v31 = vrot.slane %v3928_v7, %v3899_v43 }
 0x753   : > { %v2361_v47 = vmul.f32 %v2350_v25, %v2337_v36 }
 0x755   : > { %v2373_v53 = vsel %vm724_vm7, %v2361_v47, 0.0 }
 0x756   : > { %2374 = vadd.xlane.f32.xlu0 %v2373_v53  ;;  %v2454_v53 = vsub.s32 %v2451_v54, %v3508_v51 }
 0x771   : > { %v2317_v46 = vpop.xlane.xlu0 %2316 }
 0x772   : > { %3166 = vrcp.f32 %v2317_v46  ;;  %v2320_v41 = vpop.xlane.xlu1 %2319 }
 0x773   : > { %3168 = vrcp.f32 %v2320_v41 }
 0x77b   : > { %v2323_v45 = vpop.xlane.xlu0 %2322 }
 0x77c   : > { %v3167_v49 = vpop.eup %3166  ;;  %3170 = vrcp.f32 %v2323_v45  ;;  %v2326_v57 = vpop.xlane.xlu1 %2325 }
 0x77d   : > { %v3169_v37 = vpop.eup %3168  ;;  %3172 = vrcp.f32 %v2326_v57  ;;  %v2339_v12 = vmul.f32 %v3167_v49, %v3151_v52 }
 0x77e   : > { %v2340_v22 = vmul.f32 %v3169_v37, %v3153_v19 }
 0x77f   : > { %v2363_v60 = vmul.f32 %v2354_v39, %v2339_v12 }
 0x780   : > { %v2364_v33 = vmul.f32 %v2354_v39, %v2340_v22 }
 0x781   : > { %v2379_v32 = vsel %vm724_vm7, %v2363_v60, 0.0 }
 0x782   : > { %2380 = vadd.xlane.f32.xlu0 %v2379_v32  ;;  %v2382_v59 = vsel %vm724_vm7, %v2364_v33, 0.0 }
 0x783   : > { %2383 = vadd.xlane.f32.xlu1 %v2382_v59 }
 0x786   : > { %v3171_v42 = vpop.eup %3170 }
 0x787   : > { %v3173_v8 = vpop.eup %3172  ;;  %v2341_v11 = vmul.f32 %v3171_v42, %v3155_v5 }
 0x788   : > { %v2342_v29 = vmul.f32 %v3173_v8, %v3157_v58 }
 0x789   : > { %v2365_v50 = vmul.f32 %v2358_v31, %v2341_v11 }
 0x78a   : > { %v2366_v3 = vmul.f32 %v2358_v31, %v2342_v29 }
 0x78b   : > { %v2385_v9 = vsel %vm724_vm7, %v2365_v50, 0.0 }
 0x78c   : > { %2386 = vadd.xlane.f32.xlu0 %v2385_v9  ;;  %v2388_v27 = vsel %vm724_vm7, %v2366_v3, 0.0 }
 0x78d   : > { %2389 = vadd.xlane.f32.xlu1 %v2388_v27 }
 0x7c6   : > { %v2369_v2 = vpop.xlane.xlu0 %2368 }
 0x7c7   : > { %v2372_v18 = vpop.xlane.xlu1 %2371  ;;  %v2399_v40 = vmin.f32 %v2369_v2, 0.0  ;;  %vm2391_vm6 = vcmp.gt.f32.partialorder %v2369_v2, 0.0 }
 0x7c8   : > { %v2400_v43 = vmin.f32 %v2372_v18, 0.0  ;;  %vm2392_vm5 = vcmp.gt.f32.partialorder %v2372_v18, 0.0 }
 0x7c9   : > { %v2407_v1 = vmul.f32 1.442695, %v2399_v40  ;;  %v2439_v40 = vld [vmem:[%s4028_s4] sm:$0x1] }
 0x7ca   : > { %v2409_v52 = vmul.f32 1.442695, %v2400_v43 }
 0x7cb   : > { %v2378_v38 = vpop.xlane.xlu1 %2377  ;;  %3174 = vpow2.f32 %v2407_v1 }
 0x7cc   : > { %v2402_v7 = vmin.f32 %v2378_v38, 0.0  ;;  %3176 = vpow2.f32 %v2409_v52  ;;  %vm2394_vm10 = vcmp.gt.f32.partialorder %v2378_v38, 0.0 }
 0x7ce   : > { %v2413_v19 = vmul.f32 1.442695, %v2402_v7 }
 0x7d0   : > { %3178 = vpow2.f32 %v2413_v19 }
 0x7d5   : > { %v3175_v16 = vpop.eup %3174 }
 0x7d6   : > { %v3177_v35 = vpop.eup %3176  ;;  %v2734_v44 = vadd.f32 -1.0, %v3175_v16 }
 0x7d7   : > { %v2735_v36 = vadd.f32 -1.0, %v3177_v35 }
 0x7d8   : > { %v2431_v49 = vsel %vm2391_vm6, %v2369_v2, %v2734_v44 }
 0x7d9   : > { %v2432_v57 = vsel %vm2392_vm5, %v2372_v18, %v2735_v36  ;;  %v2455_v32 = vrot.slane %v2431_v49, %v2454_v53 }
 0x7da   : > { %v3179_v24 = vpop.eup %3178  ;;  %v2460_v59 = vrot.slane %v2432_v57, %v2459_v48 }
 0x7db   : > { %v2737_v47 = vadd.f32 -1.0, %v3179_v24 }
 0x7dc   : > { %v2462_v9 = vsel %vm2461_vm0, %v2460_v59, %v2455_v32 }
 0x7dd   : > { %v2434_v37 = vsel %vm2394_vm10, %v2378_v38, %v2737_v47 }
 0x7de   : > { %v2470_v51 = vrot.slane %v2434_v37, %v2459_v48 }
 0x7e3   : > { %v2375_v0 = vpop.xlane.xlu0 %2374 }
 0x7e4   : > { %v2401_v4 = vmin.f32 %v2375_v0, 0.0  ;;  %vm2393_vm9 = vcmp.gt.f32.partialorder %v2375_v0, 0.0 }
 0x7e6   : > { %v2411_v20 = vmul.f32 1.442695, %v2401_v4 }
 0x7e8   : > { %3180 = vpow2.f32 %v2411_v20 }
 0x7f2   : > { %v3181_v62 = vpop.eup %3180 }
 0x7f3   : > { %v2736_v34 = vadd.f32 -1.0, %v3181_v62 }
 0x7f5   : > { %v2433_v46 = vsel %vm2393_vm9, %v2375_v0, %v2736_v34  ;;  %v2441_v0 = vstv %s2742_s26 }
 0x7f6   : > { %v2466_v39 = vrot.slane %v2433_v46, %v2454_v53 }
 0x7f8   : > { %v2471_v31 = vsel %vm2461_vm0, %v2470_v51, %v2466_v39 }
 0x7f9   : > { %v2491_v56 = vsel %vm2490_vm1, %v2471_v31, %v2462_v9 }
 0x80f   : > { %v2381_v17 = vpop.xlane.xlu0 %2380 }
 0x810   : > { %v2403_v5 = vmin.f32 %v2381_v17, 0.0  ;;  %v2384_v58 = vpop.xlane.xlu1 %2383  ;;  %vm2395_vm13 = vcmp.gt.f32.partialorder %v2381_v17, 0.0 }
 0x811   : > { %v2404_v21 = vmin.f32 %v2384_v58, 0.0  ;;  %vm2396_vm2 = vcmp.gt.f32.partialorder %v2384_v58, 0.0 }
 0x812   : > { %v2415_v14 = vmul.f32 1.442695, %v2403_v5 }
 0x813   : > { %v2417_v26 = vmul.f32 1.442695, %v2404_v21 }
 0x814   : > { %3182 = vpow2.f32 %v2415_v14 }
 0x815   : > { %3184 = vpow2.f32 %v2417_v26 }
 0x819   : > { %v2387_v13 = vpop.xlane.xlu0 %2386 }
 0x81a   : > { %v2405_v28 = vmin.f32 %v2387_v13, 0.0  ;;  %v2390_v61 = vpop.xlane.xlu1 %2389  ;;  %vm2397_vm12 = vcmp.gt.f32.partialorder %v2387_v13, 0.0 }
 0x81b   : > { %v2406_v23 = vmin.f32 %v2390_v61, 0.0  ;;  %vm2398_vm15 = vcmp.gt.f32.partialorder %v2390_v61, 0.0 }
 0x81c   : > { %v2419_v30 = vmul.f32 1.442695, %v2405_v28 }
 0x81d   : > { %v2421_v10 = vmul.f32 1.442695, %v2406_v23 }
 0x81e   : > { %v3183_v25 = vpop.eup %3182  ;;  %3186 = vpow2.f32 %v2419_v30 }
 0x81f   : > { %v3185_v55 = vpop.eup %3184  ;;  %3188 = vpow2.f32 %v2421_v10  ;;  %v2738_v6 = vadd.f32 -1.0, %v3183_v25 }
 0x820   : > { %v2739_v15 = vadd.f32 -1.0, %v3185_v55 }
 0x821   : > { %v2435_v41 = vsel %vm2395_vm13, %v2381_v17, %v2738_v6 }
 0x822   : > { %v2436_v45 = vsel %vm2396_vm2, %v2384_v58, %v2739_v15  ;;  %v2475_v22 = vrot.slane %v2435_v41, %v2454_v53 }
 0x823   : > { %v2479_v60 = vrot.slane %v2436_v45, %v2459_v48 }
 0x825   : > { %v2480_v29 = vsel %vm2461_vm0, %v2479_v60, %v2475_v22 }
 0x826   : > { %v2493_v2 = vsel %vm2492_vm3, %v2480_v29, %v2491_v56 }
 0x828   : > { %v3187_v12 = vpop.eup %3186 }
 0x829   : > { %v3189_v33 = vpop.eup %3188  ;;  %v2740_v42 = vadd.f32 -1.0, %v3187_v12 }
 0x82a   : > { %v2741_v8 = vadd.f32 -1.0, %v3189_v33 }
 0x82b   : > { %v2437_v11 = vsel %vm2397_vm12, %v2387_v13, %v2740_v42 }
 0x82c   : > { %v2484_v50 = vrot.slane %v2437_v11, %v2454_v53  ;;  %v2438_v3 = vsel %vm2398_vm15, %v2390_v61, %v2741_v8 }
 0x82d   : > { %v2488_v27 = vrot.slane %v2438_v3, %v2459_v48 }
 0x82f   : > { %v2489_v18 = vsel %vm2461_vm0, %v2488_v27, %v2484_v50 }
 0x830   : > { %v2495_v38 = vsel %vm2494_vm4, %v2489_v18, %v2493_v2 }
 0x831   : > { %2910 = vmatpush3.xpose.msk.msra.mxu1 %vm724_vm7, %v2495_v38 }
 0x834   : > { %2912 = vmatmul.mubr.msk.f32.vlgmr.msra.gmra.mrb[20].mxu1 %vm724_vm7, %v2439_v40 }
 0x907   : > { %v2567_v43 = vpop.f32.mrb[20].mxu1 }
 0x908   : > { %v2568_v7 = vadd.f32 %v2567_v43, %v2441_v0  ;;  %v2913_v4 = vpop.f32.mrb[21].mxu1 }
 0x90a   : > { %2572 = vst.msk [vmem:[%s278_s9] sm:$0x1] %vm2571_vm11, %v2568_v7 }
 0x90b   : > { %3218 = shalt.err (!%p3215_p2)
}
 0x90c   : > { %s3219_s18 = scalar_lea.hbm %s3982_s13, 16  ;;  %s3223_s26 = scalar_lea.hbm %s4030_s6, 32 }
 0x90d   : > { %p3220_p3 = scmp.ne.s32.totalorder %s3982_s13, %s3219_s18  ;;  %p3224_p8 = scmp.lt.u32.totalorder %s3982_s13, %s4030_s6 }
 0x90e   : > { %p3225_p11 = scmp.lt.u32.totalorder %s3223_s26, %s3219_s18  ;;  %p3227_p10 = scmp.lt.u32.totalorder %s3219_s18, %s3982_s13 }
 0x90f   : > { %p3221_p4 = pnand %p3220_p3, %p3355_p5 }
 0x910   : > { %p3226_p9 = por %p3225_p11, %p3224_p8 }
 0x911   : > { %p3222_p7 = pneg %p3221_p4 }
 0x912   : > { %p3228_p12 = por %p3227_p10, %p3226_p9 }
 0x914   : > { %p3229_p13 = pnand %p3228_p12, %p3222_p7 }
 0x916   : > { %3232 = shalt.err (!%p3229_p13)
}
 0x917   : > { %2958 = dma.vmem_to_hbm [thread:$0]  (%p3355_p5), %s3984_s10, 16, %s3982_s13, %s2574_s14  }
 0x918 PF: > { %p2970_p0 = scmp.ge.s32.totalorder %s3271_s24, 2  ;;  %s2598_s9 = sand.u32 1, %s3259_s21  }
 0x919   : > { %s2599_s11 = scalar_lea.sflag [#allocation3], %s2598_s9 }
 0x91a   : > { %p2965_p1 = pnand %p2970_p0, %p3359_p6 }
 0x91c   : > { %3254 = dma.done.wait (!%p2965_p1), %s2599_s11, 16  }
 0x91d   : > { %3256 = vsyncadd (!%p2965_p1), %s2599_s11, 4294967280  ;;  %p17_p2 = scmp.ge.s32.totalorder %s3342_s27, 4   ;;  %s4050_s21 = smov %s3263_s22 }
 0x91e   : > { %s4051_s22 = smov %s3267_s23  ;;  %s4052_s23 = smov %s3353_s30 }
 0x91f   : > { %s4053_s24 = smov %s3342_s27  ;;  %19 = sbr.rel (!%p17_p2) target bundleno = 4 (0x4), region = 87 }
 0x926   :  { %2603 = vsyncpa [#allocation3], 1 }
 0x927   :  { %2605 = vsyncpa [#allocation3 + $0x1], 1 }
 0x928   :  { %2606 = vsyncpa [#allocation4], 1 }
 0x929   :  { %2608 = vsyncpa [#allocation4 + $0x1], 1 }

</bundles_post_ra>
